<compile_context>
chip_gen: v7x
topology: tpu7x:2x2x1
jax: 0.10.0
libtpu: 0.0.40
codegen_flags: <defaults>
</compile_context>

<pallas_src>
import functools
import numpy as np
import jax
import jax.numpy as jnp
from jax.experimental import pallas as pl
from jax.experimental.pallas import tpu as pltpu

EPS = 1e-5  # torch.nn.GroupNorm default eps


def _round_up(a, b):
    return -(-a // b) * b


def _gn1_ref(x, gamma, beta):
    # Two-pass GroupNorm(1, C) — used only by the pure-JAX reference.
    mu = jnp.mean(x, axis=-1, keepdims=True)
    var = jnp.mean(jnp.square(x - mu), axis=-1, keepdims=True)
    return (x - mu) * jax.lax.rsqrt(var + EPS) * gamma + beta


def _gn1_fused(x, gamma, beta):
    # Single-pass GroupNorm(1, C): sum and sum-of-squares together (f32,
    # var clamped at 0 to guard cancellation), halving cross-lane reductions.
    c = x.shape[-1]
    inv_c = 1.0 / c
    s1 = jnp.sum(x, axis=-1, keepdims=True)
    s2 = jnp.sum(x * x, axis=-1, keepdims=True)
    mu = s1 * inv_c
    var = jnp.maximum(s2 * inv_c - mu * mu, 0.0)
    return (x - mu) * jax.lax.rsqrt(var + EPS) * gamma + beta


def prednet_kernel(num_mods, num_preds, wide, matmul_dtype,
                   # inputs
                   actors_ref, ctrs_ref,
                   big_w_ref, bias_ref,
                   dist_w1_ref, dist_b1_ref,
                   dist_w2_ref, dist_g2_ref, dist_be2_ref,
                   agt_wd_ref, agt_g_ref, agt_be_ref,
                   cls_w1_ref, cls_g1_ref, cls_be1_ref,
                   cls_w2_ref, cls_g2_ref, cls_be2_ref,
                   cls_w3_ref, cls_b3_ref,
                   # output: one lane-dense slab, reg in [:wide], cls_m at wide+m
                   out_ref):
    p2 = 2 * num_preds
    cd = matmul_dtype
    tn, c = actors_ref.shape
    wide_pad = out_ref.shape[1]

    x = actors_ref[...]                         # (tn, C) f32
    xc = x.astype(cd)
    ctrs = ctrs_ref[...]                        # (tn, 2)
    ctrs_x = ctrs[:, 0:1]
    ctrs_y = ctrs[:, 1:2]

    # ---- ONE fused MXU pass: [all-mode regression | agt_wa projection] ----
    big = jnp.dot(xc, big_w_ref[...], preferred_element_type=jnp.float32)
    agt_x = big[:, wide_pad:]                   # (tn, C)  actors @ agt_wa

    # build centers in-register (lane parity select): lane j gets x if j even, y if odd
    lane = jax.lax.broadcasted_iota(jnp.int32, (tn, wide_pad), 1)
    centers = jnp.where(lane % 2 == 0, ctrs_x, ctrs_y)          # (tn, wide_pad)
    reg_slab = big[:, :wide_pad] + bias_ref[...] + centers      # padding lanes unused

    # ---- AttDest + cls head, all modes stacked along rows ----
    d_list = []
    for m in range(num_mods):
        dest = reg_slab[:, (m + 1) * p2 - 2:(m + 1) * p2]       # final point of mode m
        d_list.append(ctrs - dest)                              # (tn, 2)
    d = d_list[0] if num_mods == 1 else jnp.concatenate(d_list, axis=0)   # (M*tn, 2)

    # Linear(2, C) + ReLU as two VPU FMAs (a K=2 MXU matmul would waste a pass)
    w1 = dist_w1_ref[...]
    h = d[:, 0:1] * w1[0:1, :] + d[:, 1:2] * w1[1:2, :] + dist_b1_ref[...]
    h = jnp.maximum(h, 0.0)
    h = jnp.dot(h.astype(cd), dist_w2_ref[...], preferred_element_type=jnp.float32)
    h = jnp.maximum(_gn1_fused(h, dist_g2_ref[...], dist_be2_ref[...]), 0.0)

    fd = jnp.dot(h.astype(cd), agt_wd_ref[...], preferred_element_type=jnp.float32)
    if num_mods == 1:
        f = fd + agt_x
    else:
        # broadcast-add the mode-invariant agt_x instead of materializing M copies
        f = (fd.reshape(num_mods, tn, c) + agt_x[None]).reshape(num_mods * tn, c)
    f = jnp.maximum(_gn1_fused(f, agt_g_ref[...], agt_be_ref[...]), 0.0)   # (M*tn, C)

    # cls head: LinearRes(C, C) then nn.Linear(C, 1)
    y = jnp.dot(f.astype(cd), cls_w1_ref[...], preferred_element_type=jnp.float32)
    y = jnp.maximum(_gn1_fused(y, cls_g1_ref[...], cls_be1_ref[...]), 0.0)
    y = jnp.dot(y.astype(cd), cls_w2_ref[...], preferred_element_type=jnp.float32)
    y = _gn1_fused(y, cls_g2_ref[...], cls_be2_ref[...])
    y = jnp.maximum(y + f, 0.0)                               # identity residual
    c_all = jnp.sum(y * cls_w3_ref[...], axis=-1, keepdims=True) + cls_b3_ref[...]

    # pack cls scores into the padding lanes of the reg slab: one lane-dense store
    out = reg_slab
    for m in range(num_mods):
        c_m = c_all[m * tn:(m + 1) * tn]                       # (tn, 1)
        out = jnp.where(lane == wide + m, c_m, out)
    out_ref[...] = out


def prednet_pallas(actors, ctrs_all, params, num_mods, num_preds,
                   *, matmul_dtype=jnp.float32, tile_n=256):
    n, c = actors.shape
    p2 = 2 * num_preds
    wide = num_mods * p2
    wide_pad = _round_up(wide + num_mods, 128)   # lane-dense output slab width
    cd = matmul_dtype

    # host-side packing: per-mode regression weights fused along lanes, zero-padded
    # to the slab width, then agt_wa appended so the kernel does one MXU pass.
    pred_w_all = jnp.transpose(params['pred_w'], (1, 0, 2)).reshape(c, wide)
    pred_w_pad = jnp.pad(pred_w_all, ((0, 0), (0, wide_pad - wide)))
    big_w = jnp.concatenate([pred_w_pad, params['agt_wa']], axis=1).astype(cd)
    pred_b_pad = jnp.pad(params['pred_b'].reshape(1, wide),
                         ((0, 0), (0, wide_pad - wide)))

    # row tiling: big tiles amortize per-step overhead (v5e/v6e), but guarantee
    # >= 2 grid steps when there are enough rows so v7x can shard across both TCs.
    n8 = _round_up(max(n, 1), 8)
    tn = min(tile_n, n8)
    if n8 > 8 and n8 // tn < 2:
        tn = _round_up(-(-n8 // 2), 8)
    n_pad = _round_up(n, tn)

    if n_pad != n:
        actors_p = jnp.pad(actors, ((0, n_pad - n), (0, 0)))
        ctrs_p = jnp.pad(ctrs_all, ((0, n_pad - n), (0, 0)))
    else:
        actors_p, ctrs_p = actors, ctrs_all

    # MXU operands cast to matmul_dtype on the host (weights are pinned -> no
    # per-step recast in the kernel); VPU/GN params stay f32.
    flat = [
        big_w, pred_b_pad,
        params['dist_w1'], params['dist_b1'],
        params['dist_w2'].astype(cd), params['dist_g2'], params['dist_be2'],
        params['agt_wd'].astype(cd), params['agt_g'], params['agt_be'],
        params['cls_w1'].astype(cd), params['cls_g1'], params['cls_be1'],
        params['cls_w2'].astype(cd), params['cls_g2'], params['cls_be2'],
        params['cls_w3'], params['cls_b3'],
    ]

    def row_spec(width):
        return pl.BlockSpec((tn, width), lambda i: (i, 0))

    pinned = [pl.BlockSpec(a.shape, lambda i: (0, 0)) for a in flat]   # weights resident

    mm_flops = 2 * n_pad * c * (wide_pad + c)              # fused reg + agt_wa matmul
    mm_flops += 2 * num_mods * n_pad * 4 * c * c           # dist_w2, agt_wd, cls_w1, cls_w2
    w_bytes = sum(int(a.size) * int(a.dtype.itemsize) for a in flat)
    cost = pl.CostEstimate(
        flops=int(mm_flops + 12 * num_mods * n_pad * c),
        transcendentals=int(4 * num_mods * n_pad),
        bytes_accessed=int(4 * (actors_p.size + ctrs_p.size + n_pad * wide_pad)
                           + w_bytes))

    kernel = functools.partial(prednet_kernel, num_mods, num_preds, wide, matmul_dtype)
    out_p = pl.pallas_call(
        kernel,
        grid=(n_pad // tn,),
        out_shape=jax.ShapeDtypeStruct((n_pad, wide_pad), jnp.float32),
        in_specs=[row_spec(c), row_spec(2)] + pinned,
        out_specs=row_spec(wide_pad),
        compiler_params=pltpu.CompilerParams(
            dimension_semantics=("parallel",),
            vmem_limit_bytes=48 * 1024 * 1024),
        cost_estimate=cost,
    )(actors_p, ctrs_p, *flat)

    # lane-dense slab -> logical reg (N, M, P, 2) and cls (N, M); slices only.
    reg = out_p[:n, :wide].reshape(n, num_mods, num_preds, 2)
    cls = out_p[:n, wide:wide + num_mods]
    return reg, cls


def prednet_reference(actors, ctrs_all, params, num_mods, num_preds):
    # Pure-JAX mirror of the torch PredNet math, for verification.
    hp = jax.lax.Precision.HIGHEST
    regs, clss = [], []
    for m in range(num_mods):
        p = jnp.dot(actors, params['pred_w'][m], precision=hp) + params['pred_b'][m]
        p = p + jnp.tile(ctrs_all, (1, num_preds))
        dest = p[:, -2:]
        d = ctrs_all - dest
        h = jnp.maximum(jnp.dot(d, params['dist_w1'], precision=hp) + params['dist_b1'], 0.0)
        h = jnp.maximum(_gn1_ref(jnp.dot(h, params['dist_w2'], precision=hp),
                                 params['dist_g2'], params['dist_be2']), 0.0)
        f = (jnp.dot(h, params['agt_wd'], precision=hp)
             + jnp.dot(actors, params['agt_wa'], precision=hp))
        f = jnp.maximum(_gn1_ref(f, params['agt_g'], params['agt_be']), 0.0)
        y = jnp.maximum(_gn1_ref(jnp.dot(f, params['cls_w1'], precision=hp),
                                 params['cls_g1'], params['cls_be1']), 0.0)
        y = _gn1_ref(jnp.dot(y, params['cls_w2'], precision=hp),
                     params['cls_g2'], params['cls_be2'])
        y = jnp.maximum(y + f, 0.0)
        c = jnp.sum(y * params['cls_w3'], axis=-1, keepdims=True) + params['cls_b3']
        regs.append(p)
        clss.append(c)
    n = actors.shape[0]
    reg = jnp.stack(regs, axis=1).reshape(n, num_mods, num_preds, 2)
    cls = jnp.concatenate(clss, axis=1)
    return reg, cls


def net_head_forward(actors, actor_idcs, actor_ctrs, rot, orig,
                     params, num_mods, num_preds, use_pallas=True,
                     matmul_dtype=jnp.float32):
    """PredNet forward + Net-level rot/orig output transform."""
    ctrs_all = jnp.concatenate(actor_ctrs, axis=0)
    if use_pallas:
        reg, cls = prednet_pallas(actors, ctrs_all, params, num_mods, num_preds,
                                  matmul_dtype=matmul_dtype)
    else:
        reg, cls = prednet_reference(actors, ctrs_all, params, num_mods, num_preds)

    # sort modes by descending cls score (glue; trivial for num_mods == 1)
    sort_idcs = jnp.argsort(-cls, axis=1)
    cls_sorted = jnp.take_along_axis(cls, sort_idcs, axis=1)
    reg_sorted = jnp.take_along_axis(reg, sort_idcs[:, :, None, None], axis=1)

    out_cls, out_reg = [], []
    for i, idcs in enumerate(actor_idcs):
        r = jnp.matmul(reg_sorted[idcs], rot[i]) + orig[i].reshape(1, 1, 1, 2)
        out_cls.append(cls_sorted[idcs])
        out_reg.append(r)
    return out_cls, out_reg


def init_params(key, n_actor, num_mods, num_preds):
    c = n_actor
    ks = jax.random.split(key, 20)

    def w(k, shape, scale=0.1):
        return (scale * jax.random.normal(k, shape)).astype(jnp.float32)

    return dict(
        pred_w=w(ks[0], (num_mods, c, 2 * num_preds)),
        pred_b=w(ks[1], (num_mods, 1, 2 * num_preds)),
        dist_w1=w(ks[2], (2, c)),
        dist_b1=w(ks[3], (1, c)),
        dist_w2=w(ks[4], (c, c)),
        dist_g2=(1.0 + w(ks[5], (1, c))),
        dist_be2=w(ks[6], (1, c)),
        agt_wd=w(ks[7], (c, c)),
        agt_wa=w(ks[8], (c, c)),
        agt_g=(1.0 + w(ks[9], (1, c))),
        agt_be=w(ks[10], (1, c)),
        cls_w1=w(ks[11], (c, c)),
        cls_g1=(1.0 + w(ks[12], (1, c))),
        cls_be1=w(ks[13], (1, c)),
        cls_w2=w(ks[14], (c, c)),
        cls_g2=(1.0 + w(ks[15], (1, c))),
        cls_be2=w(ks[16], (1, c)),
        cls_w3=w(ks[17], (1, c)),
        cls_b3=w(ks[18], (1, 1)),
    )


if __name__ == "__main__":
    key = jax.random.PRNGKey(0)
    n_actor = 32       # config['n_actor']
    num_preds = 6      # small prediction horizon
    n_per_sample = [8, 8]
    n_total = sum(n_per_sample)

    ks = jax.random.split(key, 8)
    actors = jax.random.normal(ks[0], (n_total, n_actor), jnp.float32)
    actor_ctrs, actor_idcs = [], []
    off = 0
    for i, n in enumerate(n_per_sample):
        actor_ctrs.append(jax.random.normal(ks[1 + i], (n, 2), jnp.float32))
        actor_idcs.append(jnp.arange(off, off + n))
        off += n
    angles = jax.random.uniform(ks[4], (len(n_per_sample),), jnp.float32, 0.0, 2 * np.pi)
    rot = [jnp.array([[jnp.cos(a), -jnp.sin(a)], [jnp.sin(a), jnp.cos(a)]], jnp.float32)
           for a in angles]
    orig = [jax.random.normal(ks[5 + i], (2,), jnp.float32) for i in range(len(n_per_sample))]

    # --- config from the provided source: "1mods" ---
    num_mods = 1
    params = init_params(jax.random.PRNGKey(42), n_actor, num_mods, num_preds)

    out_cls, out_reg = net_head_forward(actors, actor_idcs, actor_ctrs, rot, orig,
                                        params, num_mods, num_preds, use_pallas=True)
    jax.block_until_ready(out_reg)
    jax.block_until_ready(out_cls)

    ref_cls, ref_reg = net_head_forward(actors, actor_idcs, actor_ctrs, rot, orig,
                                        params, num_mods, num_preds, use_pallas=False)
    for a, b in zip(out_cls, ref_cls):
        np.testing.assert_allclose(np.asarray(a), np.asarray(b), rtol=2e-2, atol=2e-2)
    for a, b in zip(out_reg, ref_reg):
        np.testing.assert_allclose(np.asarray(a), np.asarray(b), rtol=2e-2, atol=2e-2)

    # bf16 MXU inputs/weights (v5e/v6e/v7x optimization); GN/ReLU stay f32.
    # TODO(synk): confirm 1e-1 tolerance is acceptable for downstream ADE/FDE before
    # making bf16 the default matmul dtype.
    bf_cls, bf_reg = net_head_forward(actors, actor_idcs, actor_ctrs, rot, orig,
                                      params, num_mods, num_preds, use_pallas=True,
                                      matmul_dtype=jnp.bfloat16)
    jax.block_until_ready(bf_reg)
    for a, b in zip(bf_cls, ref_cls):
        np.testing.assert_allclose(np.asarray(a), np.asarray(b), rtol=1e-1, atol=1e-1)
    for a, b in zip(bf_reg, ref_reg):
        np.testing.assert_allclose(np.asarray(a), np.asarray(b), rtol=1e-1, atol=1e-1)

    # --- multi-mode config exercises the mode-stacked AttDest/cls path ---
    num_mods3 = 3
    params3 = init_params(jax.random.PRNGKey(7), n_actor, num_mods3, num_preds)
    out_cls3, out_reg3 = net_head_forward(actors, actor_idcs, actor_ctrs, rot, orig,
                                          params3, num_mods3, num_preds, use_pallas=True)
    jax.block_until_ready(out_reg3)
    ref_cls3, ref_reg3 = net_head_forward(actors, actor_idcs, actor_ctrs, rot, orig,
                                          params3, num_mods3, num_preds, use_pallas=False)
    for a, b in zip(out_cls3, ref_cls3):
        np.testing.assert_allclose(np.asarray(a), np.asarray(b), rtol=2e-2, atol=2e-2)
    for a, b in zip(out_reg3, ref_reg3):
        np.testing.assert_allclose(np.asarray(a), np.asarray(b), rtol=2e-2, atol=2e-2)

    print("KERNEL_OK")
</pallas_src>

<mosaic_0001>
module attributes {stable_mosaic.version = 11 : i64} {
  func.func @prednet_kernel(%arg0: i32, %arg1: memref<8x32xf32, #tpu.memory_space<vmem>>, %arg2: memref<8x2xf32, #tpu.memory_space<vmem>>, %arg3: memref<32x160xf32, #tpu.memory_space<vmem>>, %arg4: memref<1x128xf32, #tpu.memory_space<vmem>>, %arg5: memref<2x32xf32, #tpu.memory_space<vmem>>, %arg6: memref<1x32xf32, #tpu.memory_space<vmem>>, %arg7: memref<32x32xf32, #tpu.memory_space<vmem>>, %arg8: memref<1x32xf32, #tpu.memory_space<vmem>>, %arg9: memref<1x32xf32, #tpu.memory_space<vmem>>, %arg10: memref<32x32xf32, #tpu.memory_space<vmem>>, %arg11: memref<1x32xf32, #tpu.memory_space<vmem>>, %arg12: memref<1x32xf32, #tpu.memory_space<vmem>>, %arg13: memref<32x32xf32, #tpu.memory_space<vmem>>, %arg14: memref<1x32xf32, #tpu.memory_space<vmem>>, %arg15: memref<1x32xf32, #tpu.memory_space<vmem>>, %arg16: memref<32x32xf32, #tpu.memory_space<vmem>>, %arg17: memref<1x32xf32, #tpu.memory_space<vmem>>, %arg18: memref<1x32xf32, #tpu.memory_space<vmem>>, %arg19: memref<1x32xf32, #tpu.memory_space<vmem>>, %arg20: memref<1x1xf32, #tpu.memory_space<vmem>>, %arg21: memref<8x128xf32, #tpu.memory_space<vmem>>) attributes {dimension_semantics = [#tpu.dimension_semantics<parallel>], iteration_bounds = array<i64: 2>, scalar_prefetch = 0 : i64, scratch_operands = 0 : i64, tpu.core_type = #tpu.core_type<tc>, window_params = [{transform_indices = @transform_0, window_bounds = array<i64: 8, 32>}, {transform_indices = @transform_1, window_bounds = array<i64: 8, 2>}, {pipeline_mode = #tpu.pipeline_mode<synchronous>, transform_indices = @transform_2, window_bounds = array<i64: 32, 160>}, {pipeline_mode = #tpu.pipeline_mode<synchronous>, transform_indices = @transform_3, window_bounds = array<i64: 1, 128>}, {pipeline_mode = #tpu.pipeline_mode<synchronous>, transform_indices = @transform_4, window_bounds = array<i64: 2, 32>}, {pipeline_mode = #tpu.pipeline_mode<synchronous>, transform_indices = @transform_5, window_bounds = array<i64: 1, 32>}, {pipeline_mode = #tpu.pipeline_mode<synchronous>, transform_indices = @transform_6, window_bounds = array<i64: 32, 32>}, {pipeline_mode = #tpu.pipeline_mode<synchronous>, transform_indices = @transform_7, window_bounds = array<i64: 1, 32>}, {pipeline_mode = #tpu.pipeline_mode<synchronous>, transform_indices = @transform_8, window_bounds = array<i64: 1, 32>}, {pipeline_mode = #tpu.pipeline_mode<synchronous>, transform_indices = @transform_9, window_bounds = array<i64: 32, 32>}, {pipeline_mode = #tpu.pipeline_mode<synchronous>, transform_indices = @transform_10, window_bounds = array<i64: 1, 32>}, {pipeline_mode = #tpu.pipeline_mode<synchronous>, transform_indices = @transform_11, window_bounds = array<i64: 1, 32>}, {pipeline_mode = #tpu.pipeline_mode<synchronous>, transform_indices = @transform_12, window_bounds = array<i64: 32, 32>}, {pipeline_mode = #tpu.pipeline_mode<synchronous>, transform_indices = @transform_13, window_bounds = array<i64: 1, 32>}, {pipeline_mode = #tpu.pipeline_mode<synchronous>, transform_indices = @transform_14, window_bounds = array<i64: 1, 32>}, {pipeline_mode = #tpu.pipeline_mode<synchronous>, transform_indices = @transform_15, window_bounds = array<i64: 32, 32>}, {pipeline_mode = #tpu.pipeline_mode<synchronous>, transform_indices = @transform_16, window_bounds = array<i64: 1, 32>}, {pipeline_mode = #tpu.pipeline_mode<synchronous>, transform_indices = @transform_17, window_bounds = array<i64: 1, 32>}, {pipeline_mode = #tpu.pipeline_mode<synchronous>, transform_indices = @transform_18, window_bounds = array<i64: 1, 32>}, {pipeline_mode = #tpu.pipeline_mode<synchronous>, transform_indices = @transform_19, window_bounds = array<i64: 1, 1>}, {transform_indices = @transform_20, window_bounds = array<i64: 8, 128>}]} {
    %c0 = arith.constant 0 : index
    %c0_0 = arith.constant 0 : index
    %0 = vector.load %arg1[%c0, %c0_0] : memref<8x32xf32, #tpu.memory_space<vmem>>, vector<8x32xf32>
    %c0_1 = arith.constant 0 : index
    %c0_2 = arith.constant 0 : index
    %1 = vector.load %arg2[%c0_1, %c0_2] : memref<8x2xf32, #tpu.memory_space<vmem>>, vector<8x2xf32>
    %2 = vector.extract_strided_slice %1 {offsets = [0, 0], sizes = [8, 1], strides = [1, 1]} : vector<8x2xf32> to vector<8x1xf32>
    %3 = vector.extract_strided_slice %1 {offsets = [0, 1], sizes = [8, 1], strides = [1, 1]} : vector<8x2xf32> to vector<8x1xf32>
    %c0_3 = arith.constant 0 : index
    %c0_4 = arith.constant 0 : index
    %4 = vector.load %arg3[%c0_3, %c0_4] : memref<32x160xf32, #tpu.memory_space<vmem>>, vector<32x160xf32>
    %cst = arith.constant dense<0.000000e+00> : vector<8x160xf32>
    %5 = tpu.matmul %0, %4, %cst {dimension_numbers = #tpu.dot_dimension_numbers<[1], [0], [0], [1], [0, 0, 1, 1], [], []>} : vector<8x32xf32>, vector<32x160xf32>, vector<8x160xf32> -> vector<8x160xf32>
    %6 = vector.extract_strided_slice %5 {offsets = [0, 128], sizes = [8, 32], strides = [1, 1]} : vector<8x160xf32> to vector<8x32xf32>
    %7 = tpu.iota {dimensions = array<i32: 1>} : vector<8x128xi32>
    %c2_i32 = arith.constant 2 : i32
    %c0_i32 = arith.constant 0 : i32
    %8 = arith.cmpi eq, %c2_i32, %c0_i32 : i32
    %c1_i32 = arith.constant 1 : i32
    %9 = arith.select %8, %c1_i32, %c2_i32 : i32
    %10 = vector.broadcast %9 : i32 to vector<8x128xi32>
    %11 = arith.remsi %7, %10 : vector<8x128xi32>
    %c0_i32_5 = arith.constant 0 : i32
    %12 = vector.broadcast %c0_i32_5 : i32 to vector<8x128xi32>
    %13 = arith.cmpi ne, %11, %12 : vector<8x128xi32>
    %c0_i32_6 = arith.constant 0 : i32
    %14 = vector.broadcast %c0_i32_6 : i32 to vector<8x128xi32>
    %15 = arith.cmpi slt, %11, %14 : vector<8x128xi32>
    %c0_i32_7 = arith.constant 0 : i32
    %16 = arith.cmpi slt, %9, %c0_i32_7 : i32
    %17 = vector.broadcast %16 : i1 to vector<8x128xi1>
    %18 = vector.broadcast %17 : vector<8x128xi1> to vector<8x128xi1>
    %19 = arith.xori %15, %18 : vector<8x128xi1>
    %20 = arith.andi %19, %13 : vector<8x128xi1>
    %21 = vector.broadcast %9 : i32 to vector<8x128xi32>
    %22 = arith.addi %11, %21 : vector<8x128xi32>
    %23 = arith.select %20, %22, %11 : vector<8x128xi1>, vector<8x128xi32>
    %c0_i32_8 = arith.constant 0 : i32
    %24 = vector.broadcast %c0_i32_8 : i32 to vector<8x128xi32>
    %25 = arith.cmpi eq, %23, %24 : vector<8x128xi32>
    %26 = vector.shape_cast %2 : vector<8x1xf32> to vector<8x1xf32>
    %27 = vector.broadcast %26 : vector<8x1xf32> to vector<8x128xf32>
    %28 = vector.shape_cast %3 : vector<8x1xf32> to vector<8x1xf32>
    %29 = vector.broadcast %28 : vector<8x1xf32> to vector<8x128xf32>
    %30 = arith.select %25, %27, %29 : vector<8x128xi1>, vector<8x128xf32>
    %31 = vector.extract_strided_slice %5 {offsets = [0, 0], sizes = [8, 128], strides = [1, 1]} : vector<8x160xf32> to vector<8x128xf32>
    %c0_9 = arith.constant 0 : index
    %c0_10 = arith.constant 0 : index
    %32 = vector.load %arg4[%c0_9, %c0_10] : memref<1x128xf32, #tpu.memory_space<vmem>>, vector<1x128xf32>
    %33 = vector.broadcast %32 : vector<1x128xf32> to vector<8x128xf32>
    %34 = arith.addf %31, %33 : vector<8x128xf32>
    %35 = arith.addf %34, %30 : vector<8x128xf32>
    %36 = vector.extract_strided_slice %35 {offsets = [0, 10], sizes = [8, 2], strides = [1, 1]} : vector<8x128xf32> to vector<8x2xf32>
    %37 = arith.subf %1, %36 : vector<8x2xf32>
    %c0_11 = arith.constant 0 : index
    %c0_12 = arith.constant 0 : index
    %38 = vector.load %arg5[%c0_11, %c0_12] : memref<2x32xf32, #tpu.memory_space<vmem>>, vector<2x32xf32>
    %39 = vector.extract_strided_slice %37 {offsets = [0, 0], sizes = [8, 1], strides = [1, 1]} : vector<8x2xf32> to vector<8x1xf32>
    %40 = vector.extract_strided_slice %38 {offsets = [0, 0], sizes = [1, 32], strides = [1, 1]} : vector<2x32xf32> to vector<1x32xf32>
    %41 = vector.broadcast %39 : vector<8x1xf32> to vector<8x32xf32>
    %42 = vector.broadcast %40 : vector<1x32xf32> to vector<8x32xf32>
    %43 = arith.mulf %41, %42 : vector<8x32xf32>
    %44 = vector.extract_strided_slice %37 {offsets = [0, 1], sizes = [8, 1], strides = [1, 1]} : vector<8x2xf32> to vector<8x1xf32>
    %45 = vector.extract_strided_slice %38 {offsets = [1, 0], sizes = [1, 32], strides = [1, 1]} : vector<2x32xf32> to vector<1x32xf32>
    %46 = vector.broadcast %44 : vector<8x1xf32> to vector<8x32xf32>
    %47 = vector.broadcast %45 : vector<1x32xf32> to vector<8x32xf32>
    %48 = arith.mulf %46, %47 : vector<8x32xf32>
    %49 = arith.addf %43, %48 : vector<8x32xf32>
    %c0_13 = arith.constant 0 : index
    %c0_14 = arith.constant 0 : index
    %50 = vector.load %arg6[%c0_13, %c0_14] : memref<1x32xf32, #tpu.memory_space<vmem>>, vector<1x32xf32>
    %51 = vector.broadcast %50 : vector<1x32xf32> to vector<8x32xf32>
    %52 = arith.addf %49, %51 : vector<8x32xf32>
    %cst_15 = arith.constant 0.000000e+00 : f32
    %53 = vector.broadcast %cst_15 : f32 to vector<8x32xf32>
    %54 = arith.maximumf %52, %53 : vector<8x32xf32>
    %c0_16 = arith.constant 0 : index
    %c0_17 = arith.constant 0 : index
    %55 = vector.load %arg7[%c0_16, %c0_17] : memref<32x32xf32, #tpu.memory_space<vmem>>, vector<32x32xf32>
    %cst_18 = arith.constant dense<0.000000e+00> : vector<8x32xf32>
    %56 = tpu.matmul %54, %55, %cst_18 {dimension_numbers = #tpu.dot_dimension_numbers<[1], [0], [0], [1], [0, 0, 1, 1], [], []>} : vector<8x32xf32>, vector<32x32xf32>, vector<8x32xf32> -> vector<8x32xf32>
    %c0_19 = arith.constant 0 : index
    %c0_20 = arith.constant 0 : index
    %57 = vector.load %arg8[%c0_19, %c0_20] : memref<1x32xf32, #tpu.memory_space<vmem>>, vector<1x32xf32>
    %c0_21 = arith.constant 0 : index
    %c0_22 = arith.constant 0 : index
    %58 = vector.load %arg9[%c0_21, %c0_22] : memref<1x32xf32, #tpu.memory_space<vmem>>, vector<1x32xf32>
    %cst_23 = arith.constant dense<0.000000e+00> : vector<8xf32>
    %59 = vector.multi_reduction <add>, %56, %cst_23 [1] : vector<8x32xf32> to vector<8xf32>
    %60 = vector.shape_cast %59 : vector<8xf32> to vector<8x1xf32>
    %61 = arith.mulf %56, %56 : vector<8x32xf32>
    %cst_24 = arith.constant dense<0.000000e+00> : vector<8xf32>
    %62 = vector.multi_reduction <add>, %61, %cst_24 [1] : vector<8x32xf32> to vector<8xf32>
    %63 = vector.shape_cast %62 : vector<8xf32> to vector<8x1xf32>
    %cst_25 = arith.constant 3.125000e-02 : f32
    %64 = vector.broadcast %cst_25 : f32 to vector<8x1xf32>
    %65 = arith.mulf %60, %64 : vector<8x1xf32>
    %cst_26 = arith.constant 3.125000e-02 : f32
    %66 = vector.broadcast %cst_26 : f32 to vector<8x1xf32>
    %67 = arith.mulf %63, %66 : vector<8x1xf32>
    %68 = arith.mulf %65, %65 : vector<8x1xf32>
    %69 = arith.subf %67, %68 : vector<8x1xf32>
    %cst_27 = arith.constant 0.000000e+00 : f32
    %70 = vector.broadcast %cst_27 : f32 to vector<8x1xf32>
    %71 = arith.maximumf %69, %70 : vector<8x1xf32>
    %72 = vector.broadcast %65 : vector<8x1xf32> to vector<8x32xf32>
    %73 = arith.subf %56, %72 : vector<8x32xf32>
    %cst_28 = arith.constant 9.99999974E-6 : f32
    %74 = vector.broadcast %cst_28 : f32 to vector<8x1xf32>
    %75 = arith.addf %71, %74 : vector<8x1xf32>
    %76 = math.rsqrt %75 : vector<8x1xf32>
    %77 = vector.broadcast %76 : vector<8x1xf32> to vector<8x32xf32>
    %78 = arith.mulf %73, %77 : vector<8x32xf32>
    %79 = vector.broadcast %57 : vector<1x32xf32> to vector<8x32xf32>
    %80 = arith.mulf %78, %79 : vector<8x32xf32>
    %81 = vector.broadcast %58 : vector<1x32xf32> to vector<8x32xf32>
    %82 = arith.addf %80, %81 : vector<8x32xf32>
    %cst_29 = arith.constant 0.000000e+00 : f32
    %83 = vector.broadcast %cst_29 : f32 to vector<8x32xf32>
    %84 = arith.maximumf %82, %83 : vector<8x32xf32>
    %c0_30 = arith.constant 0 : index
    %c0_31 = arith.constant 0 : index
    %85 = vector.load %arg10[%c0_30, %c0_31] : memref<32x32xf32, #tpu.memory_space<vmem>>, vector<32x32xf32>
    %cst_32 = arith.constant dense<0.000000e+00> : vector<8x32xf32>
    %86 = tpu.matmul %84, %85, %cst_32 {dimension_numbers = #tpu.dot_dimension_numbers<[1], [0], [0], [1], [0, 0, 1, 1], [], []>} : vector<8x32xf32>, vector<32x32xf32>, vector<8x32xf32> -> vector<8x32xf32>
    %87 = arith.addf %86, %6 : vector<8x32xf32>
    %c0_33 = arith.constant 0 : index
    %c0_34 = arith.constant 0 : index
    %88 = vector.load %arg11[%c0_33, %c0_34] : memref<1x32xf32, #tpu.memory_space<vmem>>, vector<1x32xf32>
    %c0_35 = arith.constant 0 : index
    %c0_36 = arith.constant 0 : index
    %89 = vector.load %arg12[%c0_35, %c0_36] : memref<1x32xf32, #tpu.memory_space<vmem>>, vector<1x32xf32>
    %cst_37 = arith.constant dense<0.000000e+00> : vector<8xf32>
    %90 = vector.multi_reduction <add>, %87, %cst_37 [1] : vector<8x32xf32> to vector<8xf32>
    %91 = vector.shape_cast %90 : vector<8xf32> to vector<8x1xf32>
    %92 = arith.mulf %87, %87 : vector<8x32xf32>
    %cst_38 = arith.constant dense<0.000000e+00> : vector<8xf32>
    %93 = vector.multi_reduction <add>, %92, %cst_38 [1] : vector<8x32xf32> to vector<8xf32>
    %94 = vector.shape_cast %93 : vector<8xf32> to vector<8x1xf32>
    %cst_39 = arith.constant 3.125000e-02 : f32
    %95 = vector.broadcast %cst_39 : f32 to vector<8x1xf32>
    %96 = arith.mulf %91, %95 : vector<8x1xf32>
    %cst_40 = arith.constant 3.125000e-02 : f32
    %97 = vector.broadcast %cst_40 : f32 to vector<8x1xf32>
    %98 = arith.mulf %94, %97 : vector<8x1xf32>
    %99 = arith.mulf %96, %96 : vector<8x1xf32>
    %100 = arith.subf %98, %99 : vector<8x1xf32>
    %cst_41 = arith.constant 0.000000e+00 : f32
    %101 = vector.broadcast %cst_41 : f32 to vector<8x1xf32>
    %102 = arith.maximumf %100, %101 : vector<8x1xf32>
    %103 = vector.broadcast %96 : vector<8x1xf32> to vector<8x32xf32>
    %104 = arith.subf %87, %103 : vector<8x32xf32>
    %cst_42 = arith.constant 9.99999974E-6 : f32
    %105 = vector.broadcast %cst_42 : f32 to vector<8x1xf32>
    %106 = arith.addf %102, %105 : vector<8x1xf32>
    %107 = math.rsqrt %106 : vector<8x1xf32>
    %108 = vector.broadcast %107 : vector<8x1xf32> to vector<8x32xf32>
    %109 = arith.mulf %104, %108 : vector<8x32xf32>
    %110 = vector.broadcast %88 : vector<1x32xf32> to vector<8x32xf32>
    %111 = arith.mulf %109, %110 : vector<8x32xf32>
    %112 = vector.broadcast %89 : vector<1x32xf32> to vector<8x32xf32>
    %113 = arith.addf %111, %112 : vector<8x32xf32>
    %cst_43 = arith.constant 0.000000e+00 : f32
    %114 = vector.broadcast %cst_43 : f32 to vector<8x32xf32>
    %115 = arith.maximumf %113, %114 : vector<8x32xf32>
    %c0_44 = arith.constant 0 : index
    %c0_45 = arith.constant 0 : index
    %116 = vector.load %arg13[%c0_44, %c0_45] : memref<32x32xf32, #tpu.memory_space<vmem>>, vector<32x32xf32>
    %cst_46 = arith.constant dense<0.000000e+00> : vector<8x32xf32>
    %117 = tpu.matmul %115, %116, %cst_46 {dimension_numbers = #tpu.dot_dimension_numbers<[1], [0], [0], [1], [0, 0, 1, 1], [], []>} : vector<8x32xf32>, vector<32x32xf32>, vector<8x32xf32> -> vector<8x32xf32>
    %c0_47 = arith.constant 0 : index
    %c0_48 = arith.constant 0 : index
    %118 = vector.load %arg14[%c0_47, %c0_48] : memref<1x32xf32, #tpu.memory_space<vmem>>, vector<1x32xf32>
    %c0_49 = arith.constant 0 : index
    %c0_50 = arith.constant 0 : index
    %119 = vector.load %arg15[%c0_49, %c0_50] : memref<1x32xf32, #tpu.memory_space<vmem>>, vector<1x32xf32>
    %cst_51 = arith.constant dense<0.000000e+00> : vector<8xf32>
    %120 = vector.multi_reduction <add>, %117, %cst_51 [1] : vector<8x32xf32> to vector<8xf32>
    %121 = vector.shape_cast %120 : vector<8xf32> to vector<8x1xf32>
    %122 = arith.mulf %117, %117 : vector<8x32xf32>
    %cst_52 = arith.constant dense<0.000000e+00> : vector<8xf32>
    %123 = vector.multi_reduction <add>, %122, %cst_52 [1] : vector<8x32xf32> to vector<8xf32>
    %124 = vector.shape_cast %123 : vector<8xf32> to vector<8x1xf32>
    %cst_53 = arith.constant 3.125000e-02 : f32
    %125 = vector.broadcast %cst_53 : f32 to vector<8x1xf32>
    %126 = arith.mulf %121, %125 : vector<8x1xf32>
    %cst_54 = arith.constant 3.125000e-02 : f32
    %127 = vector.broadcast %cst_54 : f32 to vector<8x1xf32>
    %128 = arith.mulf %124, %127 : vector<8x1xf32>
    %129 = arith.mulf %126, %126 : vector<8x1xf32>
    %130 = arith.subf %128, %129 : vector<8x1xf32>
    %cst_55 = arith.constant 0.000000e+00 : f32
    %131 = vector.broadcast %cst_55 : f32 to vector<8x1xf32>
    %132 = arith.maximumf %130, %131 : vector<8x1xf32>
    %133 = vector.broadcast %126 : vector<8x1xf32> to vector<8x32xf32>
    %134 = arith.subf %117, %133 : vector<8x32xf32>
    %cst_56 = arith.constant 9.99999974E-6 : f32
    %135 = vector.broadcast %cst_56 : f32 to vector<8x1xf32>
    %136 = arith.addf %132, %135 : vector<8x1xf32>
    %137 = math.rsqrt %136 : vector<8x1xf32>
    %138 = vector.broadcast %137 : vector<8x1xf32> to vector<8x32xf32>
    %139 = arith.mulf %134, %138 : vector<8x32xf32>
    %140 = vector.broadcast %118 : vector<1x32xf32> to vector<8x32xf32>
    %141 = arith.mulf %139, %140 : vector<8x32xf32>
    %142 = vector.broadcast %119 : vector<1x32xf32> to vector<8x32xf32>
    %143 = arith.addf %141, %142 : vector<8x32xf32>
    %cst_57 = arith.constant 0.000000e+00 : f32
    %144 = vector.broadcast %cst_57 : f32 to vector<8x32xf32>
    %145 = arith.maximumf %143, %144 : vector<8x32xf32>
    %c0_58 = arith.constant 0 : index
    %c0_59 = arith.constant 0 : index
    %146 = vector.load %arg16[%c0_58, %c0_59] : memref<32x32xf32, #tpu.memory_space<vmem>>, vector<32x32xf32>
    %cst_60 = arith.constant dense<0.000000e+00> : vector<8x32xf32>
    %147 = tpu.matmul %145, %146, %cst_60 {dimension_numbers = #tpu.dot_dimension_numbers<[1], [0], [0], [1], [0, 0, 1, 1], [], []>} : vector<8x32xf32>, vector<32x32xf32>, vector<8x32xf32> -> vector<8x32xf32>
    %c0_61 = arith.constant 0 : index
    %c0_62 = arith.constant 0 : index
    %148 = vector.load %arg17[%c0_61, %c0_62] : memref<1x32xf32, #tpu.memory_space<vmem>>, vector<1x32xf32>
    %c0_63 = arith.constant 0 : index
    %c0_64 = arith.constant 0 : index
    %149 = vector.load %arg18[%c0_63, %c0_64] : memref<1x32xf32, #tpu.memory_space<vmem>>, vector<1x32xf32>
    %cst_65 = arith.constant dense<0.000000e+00> : vector<8xf32>
    %150 = vector.multi_reduction <add>, %147, %cst_65 [1] : vector<8x32xf32> to vector<8xf32>
    %151 = vector.shape_cast %150 : vector<8xf32> to vector<8x1xf32>
    %152 = arith.mulf %147, %147 : vector<8x32xf32>
    %cst_66 = arith.constant dense<0.000000e+00> : vector<8xf32>
    %153 = vector.multi_reduction <add>, %152, %cst_66 [1] : vector<8x32xf32> to vector<8xf32>
    %154 = vector.shape_cast %153 : vector<8xf32> to vector<8x1xf32>
    %cst_67 = arith.constant 3.125000e-02 : f32
    %155 = vector.broadcast %cst_67 : f32 to vector<8x1xf32>
    %156 = arith.mulf %151, %155 : vector<8x1xf32>
    %cst_68 = arith.constant 3.125000e-02 : f32
    %157 = vector.broadcast %cst_68 : f32 to vector<8x1xf32>
    %158 = arith.mulf %154, %157 : vector<8x1xf32>
    %159 = arith.mulf %156, %156 : vector<8x1xf32>
    %160 = arith.subf %158, %159 : vector<8x1xf32>
    %cst_69 = arith.constant 0.000000e+00 : f32
    %161 = vector.broadcast %cst_69 : f32 to vector<8x1xf32>
    %162 = arith.maximumf %160, %161 : vector<8x1xf32>
    %163 = vector.broadcast %156 : vector<8x1xf32> to vector<8x32xf32>
    %164 = arith.subf %147, %163 : vector<8x32xf32>
    %cst_70 = arith.constant 9.99999974E-6 : f32
    %165 = vector.broadcast %cst_70 : f32 to vector<8x1xf32>
    %166 = arith.addf %162, %165 : vector<8x1xf32>
    %167 = math.rsqrt %166 : vector<8x1xf32>
    %168 = vector.broadcast %167 : vector<8x1xf32> to vector<8x32xf32>
    %169 = arith.mulf %164, %168 : vector<8x32xf32>
    %170 = vector.broadcast %148 : vector<1x32xf32> to vector<8x32xf32>
    %171 = arith.mulf %169, %170 : vector<8x32xf32>
    %172 = vector.broadcast %149 : vector<1x32xf32> to vector<8x32xf32>
    %173 = arith.addf %171, %172 : vector<8x32xf32>
    %174 = arith.addf %173, %115 : vector<8x32xf32>
    %cst_71 = arith.constant 0.000000e+00 : f32
    %175 = vector.broadcast %cst_71 : f32 to vector<8x32xf32>
    %176 = arith.maximumf %174, %175 : vector<8x32xf32>
    %c0_72 = arith.constant 0 : index
    %c0_73 = arith.constant 0 : index
    %177 = vector.load %arg19[%c0_72, %c0_73] : memref<1x32xf32, #tpu.memory_space<vmem>>, vector<1x32xf32>
    %178 = vector.broadcast %177 : vector<1x32xf32> to vector<8x32xf32>
    %179 = arith.mulf %176, %178 : vector<8x32xf32>
    %cst_74 = arith.constant dense<0.000000e+00> : vector<8xf32>
    %180 = vector.multi_reduction <add>, %179, %cst_74 [1] : vector<8x32xf32> to vector<8xf32>
    %181 = vector.shape_cast %180 : vector<8xf32> to vector<8x1xf32>
    %c0_75 = arith.constant 0 : index
    %c0_76 = arith.constant 0 : index
    %182 = vector.load %arg20[%c0_75, %c0_76] : memref<1x1xf32, #tpu.memory_space<vmem>>, vector<1x1xf32>
    %183 = vector.broadcast %182 : vector<1x1xf32> to vector<8x1xf32>
    %184 = arith.addf %181, %183 : vector<8x1xf32>
    %c12_i32 = arith.constant 12 : i32
    %185 = vector.broadcast %c12_i32 : i32 to vector<8x128xi32>
    %186 = arith.cmpi eq, %7, %185 : vector<8x128xi32>
    %187 = vector.shape_cast %184 : vector<8x1xf32> to vector<8x1xf32>
    %188 = vector.broadcast %187 : vector<8x1xf32> to vector<8x128xf32>
    %189 = arith.select %186, %188, %35 : vector<8x128xi1>, vector<8x128xf32>
    %c0_77 = arith.constant 0 : index
    %c0_78 = arith.constant 0 : index
    %190 = vector.load %arg21[%c0_77, %c0_78] : memref<8x128xf32, #tpu.memory_space<vmem>>, vector<8x128xf32>
    tpu.vector_store %arg21[%c0_77, %c0_78], %189 {strides = array<i32>} : memref<8x128xf32, #tpu.memory_space<vmem>>, vector<8x128xf32>,
    return
  }
  func.func @transform_0(%arg0: i32) -> (i32, i32) {
    %c0_i32 = arith.constant 0 : i32
    %c0_i32_0 = arith.constant 0 : i32
    return %arg0, %c0_i32 : i32, i32
  }
  func.func @transform_1(%arg0: i32) -> (i32, i32) {
    %c0_i32 = arith.constant 0 : i32
    %c0_i32_0 = arith.constant 0 : i32
    return %arg0, %c0_i32 : i32, i32
  }
  func.func @transform_2(%arg0: i32) -> (i32, i32) {
    %c0_i32 = arith.constant 0 : i32
    %c0_i32_0 = arith.constant 0 : i32
    %c0_i32_1 = arith.constant 0 : i32
    return %c0_i32, %c0_i32_0 : i32, i32
  }
  func.func @transform_3(%arg0: i32) -> (i32, i32) {
    %c0_i32 = arith.constant 0 : i32
    %c0_i32_0 = arith.constant 0 : i32
    %c0_i32_1 = arith.constant 0 : i32
    return %c0_i32, %c0_i32_0 : i32, i32
  }
  func.func @transform_4(%arg0: i32) -> (i32, i32) {
    %c0_i32 = arith.constant 0 : i32
    %c0_i32_0 = arith.constant 0 : i32
    %c0_i32_1 = arith.constant 0 : i32
    return %c0_i32, %c0_i32_0 : i32, i32
  }
  func.func @transform_5(%arg0: i32) -> (i32, i32) {
    %c0_i32 = arith.constant 0 : i32
    %c0_i32_0 = arith.constant 0 : i32
    %c0_i32_1 = arith.constant 0 : i32
    return %c0_i32, %c0_i32_0 : i32, i32
  }
  func.func @transform_6(%arg0: i32) -> (i32, i32) {
    %c0_i32 = arith.constant 0 : i32
    %c0_i32_0 = arith.constant 0 : i32
    %c0_i32_1 = arith.constant 0 : i32
    return %c0_i32, %c0_i32_0 : i32, i32
  }
  func.func @transform_7(%arg0: i32) -> (i32, i32) {
    %c0_i32 = arith.constant 0 : i32
    %c0_i32_0 = arith.constant 0 : i32
    %c0_i32_1 = arith.constant 0 : i32
    return %c0_i32, %c0_i32_0 : i32, i32
  }
  func.func @transform_8(%arg0: i32) -> (i32, i32) {
    %c0_i32 = arith.constant 0 : i32
    %c0_i32_0 = arith.constant 0 : i32
    %c0_i32_1 = arith.constant 0 : i32
    return %c0_i32, %c0_i32_0 : i32, i32
  }
  func.func @transform_9(%arg0: i32) -> (i32, i32) {
    %c0_i32 = arith.constant 0 : i32
    %c0_i32_0 = arith.constant 0 : i32
    %c0_i32_1 = arith.constant 0 : i32
    return %c0_i32, %c0_i32_0 : i32, i32
  }
  func.func @transform_10(%arg0: i32) -> (i32, i32) {
    %c0_i32 = arith.constant 0 : i32
    %c0_i32_0 = arith.constant 0 : i32
    %c0_i32_1 = arith.constant 0 : i32
    return %c0_i32, %c0_i32_0 : i32, i32
  }
  func.func @transform_11(%arg0: i32) -> (i32, i32) {
    %c0_i32 = arith.constant 0 : i32
    %c0_i32_0 = arith.constant 0 : i32
    %c0_i32_1 = arith.constant 0 : i32
    return %c0_i32, %c0_i32_0 : i32, i32
  }
  func.func @transform_12(%arg0: i32) -> (i32, i32) {
    %c0_i32 = arith.constant 0 : i32
    %c0_i32_0 = arith.constant 0 : i32
    %c0_i32_1 = arith.constant 0 : i32
    return %c0_i32, %c0_i32_0 : i32, i32
  }
  func.func @transform_13(%arg0: i32) -> (i32, i32) {
    %c0_i32 = arith.constant 0 : i32
    %c0_i32_0 = arith.constant 0 : i32
    %c0_i32_1 = arith.constant 0 : i32
    return %c0_i32, %c0_i32_0 : i32, i32
  }
  func.func @transform_14(%arg0: i32) -> (i32, i32) {
    %c0_i32 = arith.constant 0 : i32
    %c0_i32_0 = arith.constant 0 : i32
    %c0_i32_1 = arith.constant 0 : i32
    return %c0_i32, %c0_i32_0 : i32, i32
  }
  func.func @transform_15(%arg0: i32) -> (i32, i32) {
    %c0_i32 = arith.constant 0 : i32
    %c0_i32_0 = arith.constant 0 : i32
    %c0_i32_1 = arith.constant 0 : i32
    return %c0_i32, %c0_i32_0 : i32, i32
  }
  func.func @transform_16(%arg0: i32) -> (i32, i32) {
    %c0_i32 = arith.constant 0 : i32
    %c0_i32_0 = arith.constant 0 : i32
    %c0_i32_1 = arith.constant 0 : i32
    return %c0_i32, %c0_i32_0 : i32, i32
  }
  func.func @transform_17(%arg0: i32) -> (i32, i32) {
    %c0_i32 = arith.constant 0 : i32
    %c0_i32_0 = arith.constant 0 : i32
    %c0_i32_1 = arith.constant 0 : i32
    return %c0_i32, %c0_i32_0 : i32, i32
  }
  func.func @transform_18(%arg0: i32) -> (i32, i32) {
    %c0_i32 = arith.constant 0 : i32
    %c0_i32_0 = arith.constant 0 : i32
    %c0_i32_1 = arith.constant 0 : i32
    return %c0_i32, %c0_i32_0 : i32, i32
  }
  func.func @transform_19(%arg0: i32) -> (i32, i32) {
    %c0_i32 = arith.constant 0 : i32
    %c0_i32_0 = arith.constant 0 : i32
    %c0_i32_1 = arith.constant 0 : i32
    return %c0_i32, %c0_i32_0 : i32, i32
  }
  func.func @transform_20(%arg0: i32) -> (i32, i32) {
    %c0_i32 = arith.constant 0 : i32
    %c0_i32_0 = arith.constant 0 : i32
    return %arg0, %c0_i32 : i32, i32
  }
}

</mosaic_0001>

<bundles_post_ra>
// kernel: tpu_custom_call.1
= control target key start
LH: loop header
LB: loop body
LE: loop exit
PB: predicated region body
PF: predicated region fallthrough
CT: control target
= control target key end

     0   :  { %s2788_s0 = inlined_call_operand.hbm [shape: f32[16,32], index: 0, kind: input, shape index: {}]   ;;  %s2789_s1 = inlined_call_operand.vmem [shape: f32[16,2], index: 1, kind: input, shape index: {}]   ;;  %s2790_s2 = inlined_call_operand.hbm [shape: f32[32,160], index: 2, kind: input, shape index: {}]   ;;  %s2791_s3 = inlined_call_operand.vmem [shape: f32[1,128], index: 3, kind: input, shape index: {}]   ;;  %s2792_s4 = inlined_call_operand.vmem [shape: f32[2,32], index: 4, kind: input, shape index: {}]   ;;  %s2793_s5 = inlined_call_operand.hbm [shape: f32[1,32], index: 5, kind: input, shape index: {}]   ;;  %s2794_s6 = inlined_call_operand.vmem [shape: f32[32,32], index: 6, kind: input, shape index: {}]   ;;  %s2795_s7 = inlined_call_operand.hbm [shape: f32[1,32], index: 7, kind: input, shape index: {}]   ;;  %s2796_s8 = inlined_call_operand.hbm [shape: f32[1,32], index: 8, kind: input, shape index: {}]   ;;  %s2797_s9 = inlined_call_operand.hbm [shape: f32[32,32], index: 9, kind: input, shape index: {}]   ;;  %s2798_s10 = inlined_call_operand.hbm [shape: f32[1,32], index: 10, kind: input, shape index: {}]   ;;  %s2799_s11 = inlined_call_operand.hbm [shape: f32[1,32], index: 11, kind: input, shape index: {}]   ;;  %s2800_s12 = inlined_call_operand.vmem [shape: f32[32,32], index: 12, kind: input, shape index: {}]   ;;  %s2801_s13 = inlined_call_operand.vmem [shape: f32[1,32], index: 13, kind: input, shape index: {}]   ;;  %s2802_s14 = inlined_call_operand.vmem [shape: f32[1,32], index: 14, kind: input, shape index: {}]   ;;  %s2803_s15 = inlined_call_operand.hbm [shape: f32[32,32], index: 15, kind: input, shape index: {}]   ;;  %s2804_s16 = inlined_call_operand.vmem [shape: f32[1,32], index: 16, kind: input, shape index: {}]   ;;  %s2805_s17 = inlined_call_operand.vmem [shape: f32[1,32], index: 17, kind: input, shape index: {}]   ;;  %s2806_s18 = inlined_call_operand.vmem [shape: f32[1,32], index: 18, kind: input, shape index: {}]   ;;  %s2807_s19 = inlined_call_operand.<no memory space> [shape: f32[1,1], index: 19, kind: input, shape index: {}]   ;;  %s2808_s20 = inlined_call_operand.hbm [shape: f32[16,128], index: 20, kind: output, shape index: {}]  }
   0x1   :  { %2817 = sst [smem:[#allocation25_spill]] %s2788_s0  ;;  %v25_v0 = vstv %s2807_s19 }
   0x2   :  { %2818 = sst [smem:[#allocation26_spill]] %s2789_s1  ;;  %26 = vst [vmem:[#allocation2] sm:$0x1] %v25_v0 }
   0x3   :  { %2819 = sst [smem:[#allocation27_spill]] %s2790_s2 }
   0x4   :  { %2820 = sst [smem:[#allocation28_spill]] %s2791_s3 }
   0x5   :  { %2821 = sst [smem:[#allocation29_spill]] %s2792_s4 }
   0x6   :  { %2822 = sst [smem:[#allocation30_spill]] %s2795_s7 }
   0x7   :  { %2823 = sst [smem:[#allocation31_spill]] %s2800_s12 }
   0x8   :  { %2824 = sst [smem:[#allocation32_spill]] %s2801_s13 }
   0x9   :  { %2825 = sst [smem:[#allocation33_spill]] %s2802_s14 }
   0xa   :  { %2826 = sst [smem:[#allocation34_spill]] %s2804_s16 }
   0xb   :  { %2827 = sst [smem:[#allocation35_spill]] %s2805_s17 }
   0xc   :  { %2828 = sst [smem:[#allocation36_spill]] %s2806_s18 }
   0xd   :  { %2829 = sst [smem:[#allocation37_spill]] %s2808_s20 }
   0xe   :  { %27 = vsyncpa [#allocation4], 0 }
   0xf   :  { %29 = vsyncpa [#allocation4 + $0x1], 0 }
  0x10   :  { %30 = vsyncpa [#allocation7], 0 }
  0x11   :  { %31 = vsyncpa [#allocation10], 0 }
  0x12   :  { %32 = vsyncpa [#allocation13], 0 }
  0x13   :  { %33 = vsyncpa [#allocation16], 0 }
  0x14   :  { %34 = vsyncpa [#allocation5], 0 }
  0x15   :  { %36 = vsyncpa [#allocation5 + $0x1], 0  ;;  %s2322_s23 = smov 0   ;;  %s2324_s24 = smov 0  }
  0x16   :  { %s2326_s2 = smov 0   ;;  %s2328_s25 = smov 0  }
  0x17 LB: > { %s2194_s19 = smov [#allocation6]   ;;  %s2343_s26 = sadd.s32 4294967295, %s2192_s25   ;;  %s2192_s25 = sphi %s2328_s25, %s2867_s25   ;;  %s2188_s2 = sphi %s2326_s2, %s2866_s2   ;;  %s2184_s24 = sphi %s2324_s24, %s2865_s24   ;;  %s2180_s23 = sphi %s2322_s23, %s2864_s23  }
  0x18   : > { %s515_s3 = sshll.u32 %s2194_s19, 4  ;;  %p1565_p0 = scmp.ge.s32.totalorder %s2192_s25, 1  ;;  %s2348_s3 = int_to_ptr.vmem [resolvable:$true] %s515_s3 }
  0x19   : > { %p2814_p1 = scmp.eq.s32.totalorder %s2343_s26, 0  ;;  %p503_p2 = scmp.lt.s32.totalorder %s2192_s25, 3 }
  0x1a   : > { %s2195_s28 = smov [#allocation9]   ;;  %s2196_s30 = smov [#allocation12]  }
  0x1b   : > { %p2350_p3 = pnand %p1565_p0, %p503_p2  ;;  %s549_s4 = sshll.u32 %s2195_s28, 4  ;;  %s2363_s4 = int_to_ptr.vmem [resolvable:$true] %s549_s4 }
  0x1c   : > { %s570_s0 = sshll.u32 %s2196_s30, 4  ;;  %s2832_s22 = sld [smem:[#allocation27_spill]]  ;;  %s2365_s0 = int_to_ptr.vmem [resolvable:$true] %s570_s0 }
  0x1d   : > { %s2830_s27 = scalar_select %p2350_p3, 1, 0 }
  0x1e   : > { %p1742_p5 = pneg %p2350_p3 }
  0x20   : > { %p2359_p6 = pnand %p1742_p5, %p2814_p1 }
  0x22   : > { %s1856_s19 = scalar_lea.hbm %s2832_s22, 1024  ;;  %p2375_p8 = pneg %p2359_p6 }
  0x23   : > { %p1857_p7 = scmp.ne.s32.totalorder %s2832_s22, %s1856_s19  ;;  %p1863_p11 = scmp.lt.u32.totalorder %s1856_s19, %s2832_s22 }
  0x25   : > { %p1859_p9 = pnand %p2375_p8, %p1857_p7 }
  0x27   : > { %p1860_p10 = pneg %p1859_p9 }
  0x29   : > { %p1865_p12 = pnand %p1863_p11, %p1860_p10 }
  0x2b   : > { %1868 = shalt.err (!%p1865_p12)
}
  0x2c   : > { %s1869_s18 = scalar_lea.vmem %s2348_s3, 1024  ;;  %p1877_p5 = scmp.lt.s32.totalorder %s2348_s3, %s2348_s3 }
  0x2d   : > { %p1870_p13 = scmp.ne.s32.totalorder %s2348_s3, %s1869_s18  ;;  %p1878_p4 = scmp.lt.s32.totalorder %s1869_s18, %s1869_s18 }
  0x2f   : > { %p1872_p0 = pnand %p1870_p13, %p2375_p8  ;;  %p1879_p7 = por %p1878_p4, %p1877_p5 }
  0x31   : > { %p1873_p2 = pneg %p1872_p0 }
  0x33   : > { %p1880_p9 = pnand %p1879_p7, %p1873_p2 }
  0x35   : > { %1883 = shalt.err (!%p1880_p9)
}
  0x36   : > { %s2197_s20 = smov 256   ;;  %s2198_s17 = smov 16  }
  0x37   : > { %1745 = dma.hbm_to_vmem [thread:$0]  (!%p2359_p6), %s2832_s22, 1024, %s2348_s3, [#allocation7], %s2197_s20, %s2197_s20, %s2198_s17  }
  0x38   : > { %s2834_s7 = sld [smem:[#allocation30_spill]] }
  0x3e   : > { %s1884_s16 = scalar_lea.hbm %s2834_s7, 16 }
  0x3f   : > { %p1885_p4 = scmp.ne.s32.totalorder %s2834_s7, %s1884_s16  ;;  %p1891_p12 = scmp.lt.u32.totalorder %s1884_s16, %s2834_s7 }
  0x41   : > { %p1887_p10 = pnand %p1885_p4, %p2375_p8 }
  0x43   : > { %p1888_p11 = pneg %p1887_p10 }
  0x45   : > { %p1893_p13 = pnand %p1891_p12, %p1888_p11 }
  0x47   : > { %1896 = shalt.err (!%p1893_p13)
}
  0x48   : > { %s1897_s3 = scalar_lea.vmem %s2363_s4, 16  ;;  %s1904_s13 = scalar_lea.vmem %s2363_s4, 32 }
  0x49   : > { %p1898_p0 = scmp.ne.s32.totalorder %s2363_s4, %s1897_s3  ;;  %p1905_p7 = scmp.lt.s32.totalorder %s2363_s4, %s2363_s4 }
  0x4a   : > { %p1906_p9 = scmp.lt.s32.totalorder %s1904_s13, %s1897_s3 }
  0x4b   : > { %p1900_p2 = pnand %p1898_p0, %p2375_p8 }
  0x4c   : > { %p1907_p4 = por %p1906_p9, %p1905_p7 }
  0x4d   : > { %p1901_p5 = pneg %p1900_p2 }
  0x4f   : > { %p1908_p10 = pnand %p1907_p4, %p1901_p5 }
  0x51   : > { %1911 = shalt.err (!%p1908_p10)
}
  0x52   : > { %1751 = dma.hbm_to_vmem [thread:$0]  (!%p2359_p6), %s2834_s7, 16, %s2363_s4, [#allocation10]  }
  0x53   : > { %s1912_s17 = scalar_lea.hbm %s2797_s9, 512 }
  0x54   : > { %p1913_p11 = scmp.ne.s32.totalorder %s2797_s9, %s1912_s17  ;;  %p1919_p0 = scmp.lt.u32.totalorder %s1912_s17, %s2797_s9 }
  0x56   : > { %p1915_p12 = pnand %p1913_p11, %p2375_p8 }
  0x58   : > { %p1916_p13 = pneg %p1915_p12 }
  0x5a   : > { %p1921_p2 = pnand %p1919_p0, %p1916_p13 }
  0x5c   : > { %1924 = shalt.err (!%p1921_p2)
}
  0x5d   : > { %s1925_s4 = scalar_lea.vmem %s2365_s0, 512  ;;  %p1933_p4 = scmp.lt.s32.totalorder %s2365_s0, %s2365_s0 }
  0x5e   : > { %p1926_p5 = scmp.ne.s32.totalorder %s2365_s0, %s1925_s4  ;;  %p1934_p10 = scmp.lt.s32.totalorder %s1925_s4, %s1925_s4 }
  0x60   : > { %p1928_p7 = pnand %p1926_p5, %p2375_p8  ;;  %p1935_p11 = por %p1934_p10, %p1933_p4 }
  0x62   : > { %p1929_p9 = pneg %p1928_p7 }
  0x64   : > { %p1936_p12 = pnand %p1935_p11, %p1929_p9 }
  0x66   : > { %1939 = shalt.err (!%p1936_p12)
}
  0x67   : > { %s2199_s18 = smov 128   ;;  %s2200_s3 = smov 8  }
  0x68   : > { %1757 = dma.hbm_to_vmem [thread:$0]  (!%p2359_p6), %s2797_s9, 512, %s2365_s0, [#allocation13], %s2199_s18, %s2199_s18, %s2200_s3  }
  0x69   : > { %s2201_s14 = smov [#allocation15]   ;;  %s2202_s20 = smov [#allocation8]  }
  0x6a   : > { %s595_s16 = sshll.u32 %s2201_s14, 4  ;;  %s535_s17 = sshll.u32 %s2202_s20, 4  ;;  %s596_s16 = int_to_ptr.vmem [resolvable:$true] %s595_s16  ;;  %s536_s17 = int_to_ptr.vmem [resolvable:$true] %s535_s17 }
  0x6b   : > { %s1940_s19 = scalar_lea.hbm %s2799_s11, 16 }
  0x6c   : > { %p1941_p13 = scmp.ne.s32.totalorder %s2799_s11, %s1940_s19  ;;  %p1947_p5 = scmp.lt.u32.totalorder %s1940_s19, %s2799_s11 }
  0x6e   : > { %p1943_p0 = pnand %p1941_p13, %p2375_p8 }
  0x70   : > { %p1944_p2 = pneg %p1943_p0 }
  0x72   : > { %p1949_p7 = pnand %p1947_p5, %p1944_p2 }
  0x74   : > { %1952 = shalt.err (!%p1949_p7)
}
  0x75   : > { %s1953_s0 = scalar_lea.vmem %s596_s16, 16  ;;  %s1960_s13 = scalar_lea.vmem %s596_s16, 32 }
  0x76   : > { %p1954_p9 = scmp.ne.s32.totalorder %s596_s16, %s1953_s0  ;;  %p1961_p11 = scmp.lt.s32.totalorder %s596_s16, %s596_s16 }
  0x77   : > { %p1962_p12 = scmp.lt.s32.totalorder %s1960_s13, %s1953_s0 }
  0x78   : > { %p1956_p4 = pnand %p1954_p9, %p2375_p8 }
  0x79   : > { %p1963_p1 = por %p1962_p12, %p1961_p11 }
  0x7a   : > { %p1957_p10 = pneg %p1956_p4 }
  0x7c   : > { %p1964_p3 = pnand %p1963_p1, %p1957_p10 }
  0x7e   : > { %1967 = shalt.err (!%p1964_p3)
}
  0x7f   : > { %1763 = dma.hbm_to_vmem [thread:$0]  (!%p2359_p6), %s2799_s11, 16, %s596_s16, [#allocation16]  }
  0x80   : > { %s1968_s20 = scalar_lea.hbm %s2793_s5, 16 }
  0x81   : > { %p1969_p13 = scmp.ne.s32.totalorder %s2793_s5, %s1968_s20  ;;  %p1975_p3 = scmp.lt.u32.totalorder %s1968_s20, %s2793_s5 }
  0x83   : > { %p1971_p0 = pnand %p1969_p13, %p2375_p8 }
  0x85   : > { %p1972_p1 = pneg %p1971_p0 }
  0x87   : > { %p1977_p2 = pnand %p1975_p3, %p1972_p1 }
  0x89   : > { %1980 = shalt.err (!%p1977_p2)
}
  0x8a   : > { %s1981_s4 = scalar_lea.vmem %s536_s17, 16  ;;  %s1988_s16 = scalar_lea.vmem %s536_s17, 32 }
  0x8b   : > { %p1982_p5 = scmp.ne.s32.totalorder %s536_s17, %s1981_s4  ;;  %p1989_p4 = scmp.lt.s32.totalorder %s536_s17, %s536_s17 }
  0x8c   : > { %p1990_p10 = scmp.lt.s32.totalorder %s1988_s16, %s1981_s4 }
  0x8d   : > { %p1984_p7 = pnand %p1982_p5, %p2375_p8 }
  0x8e   : > { %p1991_p11 = por %p1990_p10, %p1989_p4 }
  0x8f   : > { %p1985_p9 = pneg %p1984_p7 }
  0x91   : > { %p1992_p12 = pnand %p1991_p11, %p1985_p9 }
  0x93   : > { %1995 = shalt.err (!%p1992_p12)
}
  0x94   : > { %1748 = dma.hbm_to_vmem [thread:$0]  (!%p2359_p6), %s2793_s5, 16, %s536_s17, [#allocation7]  }
  0x95   : > { %s2203_s12 = smov [#allocation11]   ;;  %s2204_s7 = smov [#allocation14]  }
  0x96   : > { %s560_s14 = sshll.u32 %s2203_s12, 4  ;;  %s584_s22 = sshll.u32 %s2204_s7, 4  ;;  %s561_s14 = int_to_ptr.vmem [resolvable:$true] %s560_s14  ;;  %s585_s22 = int_to_ptr.vmem [resolvable:$true] %s584_s22 }
  0x97   : > { %s1996_s1 = scalar_lea.hbm %s2796_s8, 16 }
  0x98   : > { %p1997_p13 = scmp.ne.s32.totalorder %s2796_s8, %s1996_s1  ;;  %p2003_p3 = scmp.lt.u32.totalorder %s1996_s1, %s2796_s8 }
  0x9a   : > { %p1999_p0 = pnand %p1997_p13, %p2375_p8 }
  0x9c   : > { %p2000_p1 = pneg %p1999_p0 }
  0x9e   : > { %p2005_p2 = pnand %p2003_p3, %p2000_p1 }
  0xa0   : > { %2008 = shalt.err (!%p2005_p2)
}
  0xa1   : > { %s2009_s17 = scalar_lea.vmem %s561_s14, 16  ;;  %s2016_s0 = scalar_lea.vmem %s561_s14, 32 }
  0xa2   : > { %p2010_p5 = scmp.ne.s32.totalorder %s561_s14, %s2009_s17  ;;  %p2017_p4 = scmp.lt.s32.totalorder %s561_s14, %s561_s14 }
  0xa3   : > { %p2018_p10 = scmp.lt.s32.totalorder %s2016_s0, %s2009_s17 }
  0xa4   : > { %p2012_p7 = pnand %p2010_p5, %p2375_p8 }
  0xa5   : > { %p2019_p11 = por %p2018_p10, %p2017_p4 }
  0xa6   : > { %p2013_p9 = pneg %p2012_p7 }
  0xa8   : > { %p2020_p12 = pnand %p2019_p11, %p2013_p9 }
  0xaa   : > { %2023 = shalt.err (!%p2020_p12)
}
  0xab   : > { %1754 = dma.hbm_to_vmem [thread:$0]  (!%p2359_p6), %s2796_s8, 16, %s561_s14, [#allocation10]  }
  0xac   : > { %s2024_s21 = scalar_lea.hbm %s2798_s10, 16 }
  0xad   : > { %p2025_p13 = scmp.ne.s32.totalorder %s2798_s10, %s2024_s21  ;;  %p2031_p3 = scmp.lt.u32.totalorder %s2024_s21, %s2798_s10 }
  0xaf   : > { %p2027_p0 = pnand %p2025_p13, %p2375_p8 }
  0xb1   : > { %p2028_p1 = pneg %p2027_p0 }
  0xb3   : > { %p2033_p2 = pnand %p2031_p3, %p2028_p1 }
  0xb5   : > { %2036 = shalt.err (!%p2033_p2)
}
  0xb6   : > { %s2037_s16 = scalar_lea.vmem %s585_s22, 16  ;;  %s2044_s14 = scalar_lea.vmem %s585_s22, 32 }
  0xb7   : > { %p2038_p5 = scmp.ne.s32.totalorder %s585_s22, %s2037_s16  ;;  %p2045_p4 = scmp.lt.s32.totalorder %s585_s22, %s585_s22 }
  0xb8   : > { %p2046_p10 = scmp.lt.s32.totalorder %s2044_s14, %s2037_s16 }
  0xb9   : > { %p2040_p7 = pnand %p2038_p5, %p2375_p8 }
  0xba   : > { %p2047_p11 = por %p2046_p10, %p2045_p4 }
  0xbb   : > { %p2041_p9 = pneg %p2040_p7 }
  0xbd   : > { %p2048_p12 = pnand %p2047_p11, %p2041_p9 }
  0xbf   : > { %2051 = shalt.err (!%p2048_p12)
}
  0xc0   : > { %1760 = dma.hbm_to_vmem [thread:$0]  (!%p2359_p6), %s2798_s10, 16, %s585_s22, [#allocation13]  }
  0xc1   : > { %s2205_s13 = smov [#allocation17]   ;;  %s2052_s21 = scalar_lea.hbm %s2803_s15, 512 }
  0xc2   : > { %s614_s12 = sshll.u32 %s2205_s13, 4  ;;  %p2053_p13 = scmp.ne.s32.totalorder %s2803_s15, %s2052_s21  ;;  %s615_s12 = int_to_ptr.vmem [resolvable:$true] %s614_s12 }
  0xc3   : > { %p2059_p3 = scmp.lt.u32.totalorder %s2052_s21, %s2803_s15 }
  0xc4   : > { %p2055_p0 = pnand %p2053_p13, %p2375_p8 }
  0xc6   : > { %p2056_p1 = pneg %p2055_p0 }
  0xc8   : > { %p2061_p2 = pnand %p2059_p3, %p2056_p1 }
  0xca   : > { %2064 = shalt.err (!%p2061_p2)
}
  0xcb   : > { %s2065_s22 = scalar_lea.vmem %s615_s12, 512  ;;  %p2073_p4 = scmp.lt.s32.totalorder %s615_s12, %s615_s12 }
  0xcc   : > { %p2066_p5 = scmp.ne.s32.totalorder %s615_s12, %s2065_s22  ;;  %p2074_p10 = scmp.lt.s32.totalorder %s2065_s22, %s2065_s22 }
  0xce   : > { %p2068_p7 = pnand %p2066_p5, %p2375_p8  ;;  %p2075_p11 = por %p2074_p10, %p2073_p4 }
  0xd0   : > { %p2069_p9 = pneg %p2068_p7 }
  0xd2   : > { %p2076_p12 = pnand %p2075_p11, %p2069_p9 }
  0xd4   : > { %2079 = shalt.err (!%p2076_p12)
}
  0xd5   : > { %1766 = dma.hbm_to_vmem [thread:$0]  (!%p2359_p6), %s2803_s15, 512, %s615_s12, [#allocation16], %s2199_s18, %s2199_s18, %s2200_s3  }
  0xd6   : > { %s1564_s29 = sadd.s32 4294967294, %s2192_s25   ;;  %s2541_s28 = sadd.s32 1, %s2192_s25  }
  0xd7   : > { %s46_s17 = ssub.s32 %s2192_s25, %s2541_s28  ;;  %s49_s0 = sadd.s32 1, %s2188_s2 }
  0xd8   : > { %p47_p8 = scmp.eq.s32.totalorder %s46_s17, 0  ;;  %p56_p13 = scmp.ne.s32.totalorder %s2188_s2, %s2184_s24 }
  0xd9   : > { %p57_p0 = scmp.eq.s32.totalorder %s2192_s25, 0  ;;  %p62_p1 = scmp.ne.s32.totalorder %s2184_s24, %s2180_s23 }
  0xda   : > { %s2552_s13 = scalar_select %p47_p8, %s2188_s2, %s49_s0  }
  0xdb   : > { %p2554_p3 = por %p57_p0, %p56_p13  ;;  %p2836_p2 = scmp.eq.s32.totalorder %s2343_s26, 0 }
  0xdc   : > { %p490_p5 = scmp.eq.s32.totalorder %s2343_s26, 1  ;;  %p496_p7 = scmp.eq.s32.totalorder %s1564_s29, 1 }
  0xdd   : > { %p2560_p6 = por %p2836_p2, %p62_p1  ;;  %p1783_p9 = scmp.lt.s32.totalorder %s2192_s25, 2 }
  0xde   : > { %s640_s3 = sand.u32 1, %s2188_s2   ;;  %p2567_p4 = por %p490_p5, %p56_p13 }
  0xdf   : > { %p2571_p10 = por %p496_p7, %p62_p1  ;;  %s1575_s21 = sshll.u32 %s640_s3, 3 }
  0xe0   : > { %s2838_s12 = scalar_select %p2567_p4, 1, 0 }
  0xe1   : > { %s2839_s20 = scalar_select %p2571_p10, 1, 0 }
  0xe2   : > { %s1576_s1 = sshll.u32 %s2192_s25, 7  ;;  %s2840_s4 = sld [smem:[#allocation25_spill]] }
  0xe3   : > { %s644_s16 = scalar_lea.vmem [#allocation3], %s1575_s21  ;;  %p2585_p11 = pnand %p1783_p9, %p2554_p3 }
  0xe4   : > { %s651_s14 = sshll.u32 %s644_s16, 4  ;;  %s641_s17 = scalar_lea.sflag [#allocation4], %s640_s3  ;;  %s2581_s14 = int_to_ptr.vmem [resolvable:$true] %s651_s14 }
  0xe5   : > { %p2082_p8 = pneg %p2585_p11 }
  0xe8   : > { %s2579_s22 = scalar_lea.hbm %s2840_s4, %s1576_s1  ;;  %s2085_s19 = scalar_lea.hbm %s2840_s4, 256 }
  0xe9   : > { %s2080_s0 = scalar_lea.hbm %s2579_s22, 128  ;;  %p2086_p1 = scmp.lt.u32.totalorder %s2579_s22, %s2840_s4 }
  0xea   : > { %p2081_p12 = scmp.ne.s32.totalorder %s2579_s22, %s2080_s0  ;;  %p2087_p3 = scmp.lt.u32.totalorder %s2085_s19, %s2080_s0 }
  0xeb   : > { %p2089_p5 = scmp.lt.u32.totalorder %s2080_s0, %s2579_s22 }
  0xec   : > { %p2083_p13 = pnand %p2082_p8, %p2081_p12  ;;  %p2088_p2 = por %p2087_p3, %p2086_p1 }
  0xee   : > { %p2084_p0 = pneg %p2083_p13  ;;  %p2090_p7 = por %p2089_p5, %p2088_p2 }
  0xf0   : > { %p2091_p9 = pnand %p2090_p7, %p2084_p0 }
  0xf2   : > { %2094 = shalt.err (!%p2091_p9)
}
  0xf3   : > { %s2095_s3 = scalar_lea.vmem %s2581_s14, 128  ;;  %s2206_s16 = smov [#allocation3]  }
  0xf4   : > { %p2096_p12 = scmp.ne.s32.totalorder %s2581_s14, %s2095_s3  ;;  %s2100_s21 = sshll.u32 %s2206_s16, 4  ;;  %s2101_s21 = int_to_ptr.vmem [resolvable:$false] %s2100_s21 }
  0xf5   : > { %s2102_s1 = scalar_lea.vmem %s2101_s21, 256  ;;  %p2103_p4 = scmp.lt.s32.totalorder %s2581_s14, %s2101_s21 }
  0xf6   : > { %p2098_p13 = pnand %p2096_p12, %p2082_p8  ;;  %p2104_p1 = scmp.lt.s32.totalorder %s2102_s1, %s2095_s3 }
  0xf8   : > { %p2099_p10 = pneg %p2098_p13  ;;  %p2105_p3 = por %p2104_p1, %p2103_p4 }
  0xfa   : > { %p2106_p2 = pnand %p2105_p3, %p2099_p10 }
  0xfc   : > { %2109 = shalt.err (!%p2106_p2)
}
  0xfd   : > { %1770 = dma.hbm_to_vmem [thread:$0]  (!%p2585_p11), %s2579_s22, 128, %s2581_s14, %s641_s17  }
  0xfe   : > { %p2842_p0 = scmp.ne.s32.totalorder %s2830_s27, 0 }
  0xff   : > { %s2617_s0 = sand.u32 (!%p2842_p0), 1, %s2184_s24  }
 0x100   : > { %667 = sbr.rel (%p2842_p0) target bundleno = 2593 (0xa21), region = 100  ;;  %s1578_s19 = sshll.u32 (!%p2842_p0), %s2617_s0, 3 }
 0x101   : > { %s670_s7 = scalar_lea.sflag (!%p2842_p0), [#allocation4], %s2617_s0  ;;  %s2623_s30 = scalar_lea.vmem (!%p2842_p0), [#allocation3], %s1578_s19 }
 0x107   : > { %2155 = dma.done.wait (%p2560_p6), %s670_s7, 128  }
 0x108   : > { %2157 = vsyncadd (%p2560_p6), %s670_s7, 4294967168  ;;  %p2843_p4 = scmp.eq.s32.totalorder %s2343_s26, 0 }
 0x10a   : > { %2159 = dma.done.wait (%p2843_p4), [#allocation7], 1040   ;;  %p2844_p10 = pmov %p2843_p4 }
 0x10b   : > { %p2845_p11 = pmov %p2843_p4 }
 0x10c   : > { %2161 = vsyncadd (%p2844_p10), [#allocation7], 4294966256 }
 0x10d   : > { %2163 = dma.done.wait (%p2845_p11), [#allocation10], 32   ;;  %p2846_p8 = pmov %p2843_p4 }
 0x10e   : > { %p2847_p5 = pmov %p2843_p4 }
 0x10f   : > { %2165 = vsyncadd (%p2846_p8), [#allocation10], 4294967264 }
 0x110   : > { %2167 = dma.done.wait (%p2847_p5), [#allocation13], 528   ;;  %p2848_p7 = pmov %p2843_p4 }
 0x111   : > { %p2849_p6 = pmov %p2843_p4 }
 0x112   : > { %2169 = vsyncadd (%p2848_p7), [#allocation13], 4294966768 }
 0x113   : > { %2171 = dma.done.wait (%p2849_p6), [#allocation16], 528   ;;  %p2850_p9 = pmov %p2843_p4 }
 0x114   : > { %p766_p12 = scmp.lt.s32.totalorder %s2343_s26, 1  ;;  %v2207_v1 = vmov 0.0   ;;  %v2208_v2 = vmov 0   ;;  %v773_v3 = vld [vmem:[#allocation6 + $0x8] sm:$0xff]  ;;  %v775_v4 = vld [vmem:[#allocation6 + $0x18] sm:$0xff]  ;;  %v772_v5 = vld [vmem:[#allocation6] sm:$0xff]  ;;  %v855_v18 = vlaneseq }
 0x115   : > { %2173 = vsyncadd (%p2850_p9), [#allocation16], 4294966768  ;;  %848 = vmatprep.mubr.f32.mxu0 %v2207_v1  ;;  %1843 = vset.pattern.permute.xlu0 %v2208_v2  ;;  %s2851_s29 = sld [smem:[#allocation26_spill]]  ;;  %v1674_v6 = vpack.c.bf16 %v775_v4, %v773_v3  ;;  %v774_v7 = vld [vmem:[#allocation6 + $0x10] sm:$0xff]  ;;  %v777_v8 = vld [vmem:[#allocation6 + $0x28] sm:$0xff]  ;;  %vm780_vm0 = vcmask 261120  }
 0x116   : > { %s767_s27 = scalar_select %p766_p12, %s2343_s26, 1  ;;  %1845 = vset.pattern.permute.xlu1 %v2208_v2  ;;  %v779_v9 = vld [vmem:[#allocation6 + $0x38] sm:$0xff]  ;;  %v1676_v10 = vpack.c.bf16 %v774_v7, %v772_v5  ;;  %v776_v12 = vld [vmem:[#allocation6 + $0x20] sm:$0xff]  ;;  %v778_v13 = vld [vmem:[#allocation6 + $0x30] sm:$0xff]  ;;  %v2209_v17 = vmov 1   ;;  %v2653_v19 = vand.u32 127, %v855_v18 }
 0x117   : > { %v1678_v11 = vpack.c.bf16 %v779_v9, %v777_v8  ;;  %1675 = vmatprep.subr.bf16.mxu0 %v1674_v6  ;;  %v1680_v15 = vpack.c.bf16 %v778_v13, %v776_v12  ;;  %v770_v16 = vld [vmem:[%s2623_s30] sm:$0xff]  ;;  %s2852_s21 = sld [smem:[#allocation28_spill]]  ;;  %s2210_s1 = smov 118   ;;  %v2211_v34 = vmov 0.0|0.0   ;;  %v927_v36 = vld [vmem:[%s2794_s6 + $0x18] sm:$0xff]  ;;  %vm2212_vm2 = vmmov 0  }
 0x118   : > { %s1588_s18 = sshll.u32 %s767_s27, 3  ;;  %1677 = vmatpush1.bf16.msra.mxu0 %v1676_v10  ;;  %v861_v21 = vand.u32 1, %v2653_v19  ;;  %v924_v31 = vld [vmem:[%s2794_s6] sm:$0xff]  ;;  %v925_v32 = vld [vmem:[%s2794_s6 + $0x8] sm:$0xff]  ;;  %1682 = vmatprep.subr.bf16.mxu1 %v2211_v34  ;;  %v926_v35 = vld [vmem:[%s2794_s6 + $0x10] sm:$0xff]  ;;  %v901_v38 = vshrl.u32 %v855_v18, 7 }
 0x119   : > { %1679 = vmatprep.subr.bf16.mxu0 %v1678_v11  ;;  %v1683_v33 = vpack.c.bf16 %v925_v32, %v924_v31  ;;  %v1686_v37 = vpack.c.bf16 %v927_v36, %v926_v35  ;;  %1638 = vmatprep.mubr.msk.f32.mxu1 %vm2212_vm2, %v2207_v1  ;;  %v1591_v48 = vld [vmem:[#allocation8] ss:$0 sm:$0xff]  ;;  %v1034_v57 = vld [vmem:[#allocation12] sm:$0xff]  ;;  %v1035_v58 = vld [vmem:[#allocation12 + $0x8] sm:$0xff]  ;;  %s2854_s30 = sld [smem:[#allocation31_spill]]  ;;  %s2856_s27 = sld [smem:[#allocation33_spill]] }
 0x11a   : > { %vm869_vm1 = vcmp.eq.s32.totalorder %v861_v21, 0  ;;  %v902_v39 = vsub.s32 0, %v901_v38  ;;  %v911_v40 = vsub.s32 1, %v901_v38  ;;  %v1689_v59 = vpack.c.bf16 %v1035_v58, %v1034_v57  ;;  %v1036_v60 = vld [vmem:[#allocation12 + $0x10] sm:$0xff]  ;;  %v1037_v61 = vld [vmem:[#allocation12 + $0x18] sm:$0xff]  ;;  %s2857_s14 = sld [smem:[#allocation34_spill]] }
 0x11b   : > { %s769_s17 = scalar_lea.vmem %s2851_s29, %s1588_s18  ;;  %1684 = vmatpush3.bf16.msra.mxu1 %v1683_v33  ;;  %v1692_v62 = vpack.c.bf16 %v1037_v61, %v1036_v60  ;;  %v1593_v10 = vld [vmem:[#allocation9] ss:$0 sm:$0xff]  ;;  %v1594_v12 = vld [vmem:[#allocation11] ss:$0 sm:$0xff]  ;;  %s2858_s3 = sld [smem:[#allocation35_spill]]  ;;  %vm1384_vm3 = vcmp.eq.s32.totalorder %v2653_v19, 12 }
 0x11c   : > { %v771_v14 = vld [vmem:[%s769_s17] sm:$0xff]  ;;  %1681 = vmatpush1.bf16.msra.mxu0 %v1680_v15  ;;  %1685 = vmatprep.subr.bf16.mxu1 %v2211_v34  ;;  %s1607_s7 = sshll.u32 %s2343_s26, 7  ;;  %s2860_s29 = sld [smem:[#allocation37_spill]] }
 0x11d   : > { %872 = vperm.xlu0 %1843, %v771_v14   ;;  %v1590_v22 = vld [vmem:[%s2852_s21] ss:$0 sm:$0xff]  ;;  %1688 = vmatprep.subr.bf16.mxu0 %v2211_v34  ;;  %s2853_s21 = sld [smem:[#allocation29_spill]]  ;;  %s1393_s26 = scalar_lea.sflag [#allocation5], %s2617_s0 }
 0x11e   : > { %p2861_p1 = scmp.ne.s32.totalorder %s2838_s12, 0 }
 0x11f   : > { %1589 = vmatmul.mubr.msk.f32.vlgmr.msra.gmra.mrb[0].mxu0 %vm780_vm0, %v770_v16  ;;  %1687 = vmatpush3.bf16.msra.mxu1 %v1686_v37 }
 0x120   : > { %1694 = vmatprep.subr.bf16.mxu1 %v2211_v34  ;;  %1649 = vmatprep.mubr.msk.f32.mxu0 %vm2212_vm2, %v2207_v1 }
 0x121   : > { %1844 = vset.pattern.permute.xlu0 %v2209_v17  ;;  %1690 = vmatpush3.bf16.msra.mxu0 %v1689_v59 }
 0x122   : > { %876 = vperm.xlu0 %1844, %v771_v14   ;;  %1691 = vmatprep.subr.bf16.mxu0 %v2211_v34  ;;  %s2743_s17 = scalar_lea.hbm %s2860_s29, %s1607_s7 }
 0x123   : > { %v894_v41 = vld [vmem:[%s2853_s21] sm:$0x3]  ;;  %s2855_s21 = sld [smem:[#allocation32_spill]] }
 0x124   : > { %v903_v43 = vrot.slane %v894_v41, %v902_v39  ;;  %v912_v44 = vrot.slane %v894_v41, %v911_v40  ;;  %v1596_v40 = vld [vmem:[#allocation14] ss:$0 sm:$0xff] }
 0x125   : > { %1693 = vmatpush3.bf16.msra.mxu0 %v1692_v62 }
 0x126   : > { %1847 = vset.pattern.permute.xlu0 %v2208_v2  ;;  %1700 = vmatprep.subr.bf16.mxu0 %v2211_v34 }
 0x19c   : > { %v873_v20 = vpop.permute.xlu0 %872 }
 0x1a1   : > { %v877_v23 = vpop.permute.xlu0 %876 }
 0x1a2   : > { %v879_v27 = vsel %vm869_vm1, %v873_v20, %v877_v23  ;;  %v1144_v23 = vld [vmem:[%s2854_s30] sm:$0xff] }
 0x1f2   : > { %v850_v24 = vpop.f32.mrb[0].mxu0 }
 0x1f3   : > { %v887_v25 = vadd.f32 %v1590_v22, %v850_v24  ;;  %v2659_v26 = vpop.f32.mrb[1].mxu0  ;;  %v1145_v24 = vld [vmem:[%s2854_s30 + $0x8] sm:$0xff] }
 0x1f5   : > { %v2661_v28 = vadd.f32 %v887_v25, %v879_v27  ;;  %v1146_v25 = vld [vmem:[%s2854_s30 + $0x10] sm:$0xff] }
 0x1f7   : > { %890 = vrot.lane.b32.xlu1 %v2661_v28, %s2210_s1  ;;  %s2859_s1 = sld [smem:[#allocation36_spill]] }
 0x269   : > { %v891_v29 = vpop.permute.xlu1 %890 }
 0x26a   : > { %v893_v30 = vsub.f32 %v771_v14, %v891_v29 }
 0x26c   : > { %897 = vperm.xlu1 %1845, %v893_v30  }
 0x270   : > { %1846 = vset.pattern.permute.xlu1 %v2209_v17 }
 0x271   : > { %906 = vperm.xlu1 %1846, %v893_v30  }
 0x2eb   : > { %v898_v42 = vpop.permute.xlu1 %897 }
 0x2ec   : > { %v904_v46 = vmul.f32 %v903_v43, %v898_v42  ;;  %v1597_v42 = vld [vmem:[#allocation15] ss:$0 sm:$0xff] }
 0x2f0   : > { %v907_v45 = vpop.permute.xlu1 %906 }
 0x2f1   : > { %v913_v47 = vmul.f32 %v912_v44, %v907_v45 }
 0x2f3   : > { %v914_v49 = vadd.f32 %v913_v47, %v904_v46 }
 0x2f5   : > { %v922_v50 = vadd.f32 %v1591_v48, %v914_v49 }
 0x2f7   : > { %v923_v51 = vmax.f32 %v922_v50, 0.0 }
 0x2f9   : > { %1639 = vmatmul.mubr.msk.f32.vlgmr.msra.gmra.mrb[0].mxu1 %vm780_vm0, %v923_v51  ;;  %v1254_v51 = vld [vmem:[#allocation17] sm:$0xff] }
 0x2fa   : > { %1660 = vmatprep.mubr.msk.f32.mxu1 %vm2212_vm2, %v2207_v1 }
 0x3cc   : > { %v997_v52 = vpop.f32.mrb[0].mxu1 }
 0x3cd   : > { %v1640_v53 = vpop.f32.mrb[1].mxu1  ;;  %v1003_v54 = vsel %vm780_vm0, %v997_v52, 0.0  ;;  %v1006_v55 = vmul.f32 %v997_v52, %v997_v52 }
 0x3ce   : > { %1004 = vadd.xlane.f32.xlu0 %v1003_v54  ;;  %v1256_v54 = vld [vmem:[#allocation17 + $0x10] sm:$0xff] }
 0x3cf   : > { %v1007_v56 = vsel %vm780_vm0, %v1006_v55, 0.0  ;;  %v1257_v55 = vld [vmem:[#allocation17 + $0x18] sm:$0xff] }
 0x3d0   : > { %1008 = vadd.xlane.f32.xlu1 %v1007_v56  ;;  %v1704_v56 = vpack.c.bf16 %v1257_v55, %v1256_v54 }
 0x45b   : > { %v1005_v63 = vpop.xlane.xlu0 %1004 }
 0x45c   : > { %v1010_v0 = vmul.f32 0.03125, %v1005_v63 }
 0x45d   : > { %v1009_v2 = vpop.xlane.xlu1 %1008 }
 0x45e   : > { %v1012_v3 = vmul.f32 %v1010_v0, %v1010_v0  ;;  %v1011_v4 = vmul.f32 0.03125, %v1009_v2  ;;  %v1015_v8 = vsub.f32 %v997_v52, %v1010_v0  ;;  %v1255_v52 = vld [vmem:[#allocation17 + $0x8] sm:$0xff] }
 0x45f   : > { %v1701_v53 = vpack.c.bf16 %v1255_v52, %v1254_v51 }
 0x460   : > { %v1013_v5 = vsub.f32 %v1011_v4, %v1012_v3  ;;  %v1599_v4 = vld [vmem:[%s2855_s21] ss:$0 sm:$0xff] }
 0x462   : > { %v1014_v6 = vmax.f32 %v1013_v5, 0.0 }
 0x464   : > { %v1016_v7 = vadd.f32 1e-05, %v1014_v6 }
 0x466   : > { %1848 = vrsqrt.f32 %v1016_v7 }
 0x470   : > { %v1849_v9 = vpop.eup %1848 }
 0x471   : > { %v1018_v11 = vmul.f32 %v1849_v9, %v1015_v8 }
 0x473   : > { %v1025_v13 = vmul.f32 %v1593_v10, %v1018_v11 }
 0x475   : > { %v1032_v14 = vadd.f32 %v1594_v12, %v1025_v13 }
 0x477   : > { %v1033_v15 = vmax.f32 %v1032_v14, 0.0 }
 0x479   : > { %1650 = vmatmul.mubr.msk.f32.vlgmr.msra.gmra.mrb[2].mxu0 %vm780_vm0, %v1033_v15 }
 0x47a   : > { %1671 = vmatprep.mubr.msk.f32.mxu0 %vm2212_vm2, %v2207_v1  ;;  %v1695_v1 = vpack.c.bf16 %v1145_v24, %v1144_v23  ;;  %1702 = vmatpush3.bf16.msra.mxu0 %v1701_v53 }
 0x47b   : > { %1703 = vmatprep.subr.bf16.mxu0 %v2211_v34 }
 0x47c   : > { %1696 = vmatpush3.bf16.msra.mxu1 %v1695_v1  ;;  %v1602_v1 = vld [vmem:[%s2857_s14] ss:$0 sm:$0xff] }
 0x47d   : > { %1697 = vmatprep.subr.bf16.mxu1 %v2211_v34  ;;  %v1600_v34 = vld [vmem:[%s2856_s27] ss:$0 sm:$0xff]  ;;  %s765_s27 = scalar_lea.vmem [#allocation18], %s1578_s19  ;;  %s2213_s19 = smov [#allocation18]  }
 0x47e   : > { %1705 = vmatpush3.bf16.msra.mxu0 %v1704_v56  ;;  %s1406_s18 = sshll.u32 %s765_s27, 4  ;;  %s2114_s16 = sshll.u32 %s2213_s19, 4  ;;  %s2745_s18 = int_to_ptr.vmem [resolvable:$true] %s1406_s18  ;;  %s2115_s16 = int_to_ptr.vmem [resolvable:$false] %s2114_s16 }
 0x47f   : > { %s2116_s21 = scalar_lea.vmem %s2115_s16, 256  ;;  %p2117_p0 = scmp.lt.s32.totalorder %s2745_s18, %s2115_s16 }
 0x54c   : > { %v1107_v16 = vpop.f32.mrb[2].mxu0 }
 0x54d   : > { %v1108_v17 = vadd.f32 %v1107_v16, %v2659_v26  ;;  %v1651_v18 = vpop.f32.mrb[3].mxu0  ;;  %v1147_v26 = vld [vmem:[%s2854_s30 + $0x18] sm:$0xff] }
 0x54e   : > { %v1698_v27 = vpack.c.bf16 %v1147_v26, %v1146_v25  ;;  %v1603_v26 = vld [vmem:[%s2858_s3] ss:$0 sm:$0xff]  ;;  %s2110_s3 = scalar_lea.vmem %s2745_s18, 128 }
 0x54f   : > { %v1113_v20 = vsel %vm780_vm0, %v1108_v17, 0.0  ;;  %v1116_v21 = vmul.f32 %v1108_v17, %v1108_v17  ;;  %p2111_p13 = scmp.ne.s32.totalorder %s2745_s18, %s2110_s3  ;;  %p2118_p4 = scmp.lt.s32.totalorder %s2116_s21, %s2110_s3 }
 0x550   : > { %1114 = vadd.xlane.f32.xlu0 %v1113_v20  ;;  %1699 = vmatpush3.bf16.msra.mxu1 %v1698_v27 }
 0x551   : > { %v1117_v22 = vsel %vm780_vm0, %v1116_v21, 0.0  ;;  %p2112_p3 = pnand %p2111_p13, %p2861_p1  ;;  %p2119_p10 = por %p2118_p4, %p2117_p0 }
 0x553   : > { %p2113_p2 = pneg %p2112_p3 }
 0x554   : > { %1118 = vadd.xlane.f32.xlu0 %v1117_v22 }
 0x555   : > { %p2120_p11 = pnand %p2119_p10, %p2113_p2 }
 0x5dd   : > { %v1115_v29 = vpop.xlane.xlu0 %1114 }
 0x5de   : > { %v1120_v30 = vmul.f32 0.03125, %v1115_v29 }
 0x5e0   : > { %v1122_v32 = vmul.f32 %v1120_v30, %v1120_v30  ;;  %v1125_v38 = vsub.f32 %v1108_v17, %v1120_v30 }
 0x5e1   : > { %v1119_v31 = vpop.xlane.xlu0 %1118 }
 0x5e2   : > { %v1121_v33 = vmul.f32 0.03125, %v1119_v31  ;;  %v1604_v31 = vld [vmem:[%s2859_s1] ss:$0 sm:$0xff] }
 0x5e4   : > { %v1123_v35 = vsub.f32 %v1121_v33, %v1122_v32 }
 0x5e6   : > { %v1124_v36 = vmax.f32 %v1123_v35, 0.0 }
 0x5e8   : > { %v1126_v37 = vadd.f32 1e-05, %v1124_v36  ;;  %v1605_v36 = vld [vmem:[#allocation2] ss:$0 sm:$0xff] }
 0x5ea   : > { %1850 = vrsqrt.f32 %v1126_v37 }
 0x5f4   : > { %v1851_v39 = vpop.eup %1850 }
 0x5f5   : > { %v1128_v41 = vmul.f32 %v1851_v39, %v1125_v38 }
 0x5f7   : > { %v1135_v43 = vmul.f32 %v1596_v40, %v1128_v41 }
 0x5f9   : > { %v1142_v44 = vadd.f32 %v1597_v42, %v1135_v43 }
 0x5fb   : > { %v1143_v45 = vmax.f32 %v1142_v44, 0.0 }
 0x5fd   : > { %1661 = vmatmul.mubr.msk.f32.vlgmr.msra.gmra.mrb[2].mxu1 %vm780_vm0, %v1143_v45 }
 0x6d0   : > { %v1217_v46 = vpop.f32.mrb[2].mxu1 }
 0x6d1   : > { %v1662_v47 = vpop.f32.mrb[3].mxu1  ;;  %v1223_v48 = vsel %vm780_vm0, %v1217_v46, 0.0  ;;  %v1226_v49 = vmul.f32 %v1217_v46, %v1217_v46 }
 0x6d2   : > { %1224 = vadd.xlane.f32.xlu1 %v1223_v48 }
 0x6d3   : > { %v1227_v50 = vsel %vm780_vm0, %v1226_v49, 0.0 }
 0x6d4   : > { %1228 = vadd.xlane.f32.xlu0 %v1227_v50 }
 0x75f   : > { %v1225_v57 = vpop.xlane.xlu1 %1224 }
 0x760   : > { %v1230_v58 = vmul.f32 0.03125, %v1225_v57 }
 0x761   : > { %v1229_v59 = vpop.xlane.xlu0 %1228 }
 0x762   : > { %v1232_v60 = vmul.f32 %v1230_v58, %v1230_v58  ;;  %v1231_v61 = vmul.f32 0.03125, %v1229_v59  ;;  %v1235_v2 = vsub.f32 %v1217_v46, %v1230_v58 }
 0x764   : > { %v1233_v62 = vsub.f32 %v1231_v61, %v1232_v60 }
 0x766   : > { %v1234_v63 = vmax.f32 %v1233_v62, 0.0 }
 0x768   : > { %v1236_v0 = vadd.f32 1e-05, %v1234_v63 }
 0x76a   : > { %1852 = vrsqrt.f32 %v1236_v0 }
 0x774   : > { %v1853_v3 = vpop.eup %1852 }
 0x775   : > { %v1238_v5 = vmul.f32 %v1853_v3, %v1235_v2 }
 0x777   : > { %v1245_v6 = vmul.f32 %v1599_v4, %v1238_v5 }
 0x779   : > { %v1252_v7 = vadd.f32 %v1600_v34, %v1245_v6 }
 0x77b   : > { %v1253_v8 = vmax.f32 %v1252_v7, 0.0 }
 0x77d   : > { %1672 = vmatmul.mubr.msk.f32.vlgmr.msra.gmra.mrb[4].mxu0 %vm780_vm0, %v1253_v8 }
 0x850   : > { %v1327_v9 = vpop.f32.mrb[4].mxu0 }
 0x851   : > { %v1673_v10 = vpop.f32.mrb[5].mxu0  ;;  %v1333_v11 = vsel %vm780_vm0, %v1327_v9, 0.0  ;;  %v1336_v12 = vmul.f32 %v1327_v9, %v1327_v9 }
 0x852   : > { %1334 = vadd.xlane.f32.xlu1 %v1333_v11 }
 0x853   : > { %v1337_v13 = vsel %vm780_vm0, %v1336_v12, 0.0 }
 0x854   : > { %1338 = vadd.xlane.f32.xlu0 %v1337_v13 }
 0x8df   : > { %v1335_v14 = vpop.xlane.xlu1 %1334 }
 0x8e0   : > { %v1340_v15 = vmul.f32 0.03125, %v1335_v14 }
 0x8e1   : > { %v1339_v16 = vpop.xlane.xlu0 %1338 }
 0x8e2   : > { %v1342_v17 = vmul.f32 %v1340_v15, %v1340_v15  ;;  %v1341_v18 = vmul.f32 0.03125, %v1339_v16  ;;  %v1345_v23 = vsub.f32 %v1327_v9, %v1340_v15 }
 0x8e4   : > { %v1343_v20 = vsub.f32 %v1341_v18, %v1342_v17 }
 0x8e6   : > { %v1344_v21 = vmax.f32 %v1343_v20, 0.0 }
 0x8e8   : > { %v1346_v22 = vadd.f32 1e-05, %v1344_v21 }
 0x8ea   : > { %1854 = vrsqrt.f32 %v1346_v22 }
 0x8f4   : > { %v1855_v24 = vpop.eup %1854 }
 0x8f5   : > { %v1348_v25 = vmul.f32 %v1855_v24, %v1345_v23 }
 0x8f7   : > { %v1355_v27 = vmul.f32 %v1602_v1, %v1348_v25 }
 0x8f9   : > { %v1362_v29 = vadd.f32 %v1603_v26, %v1355_v27 }
 0x8fb   : > { %v1363_v30 = vadd.f32 %v1362_v29, %v1143_v45 }
 0x8fd   : > { %v1364_v32 = vmax.f32 %v1363_v30, 0.0 }
 0x8ff   : > { %v1372_v33 = vmul.f32 %v1604_v31, %v1364_v32 }
 0x901   : > { %v1373_v35 = vsel %vm780_vm0, %v1372_v33, 0.0 }
 0x902   : > { %1374 = vadd.xlane.f32.xlu1 %v1373_v35 }
 0x98f   : > { %v1375_v37 = vpop.xlane.xlu1 %1374 }
 0x990   : > { %v1383_v38 = vadd.f32 %v1605_v36, %v1375_v37 }
 0x992   : > { %1387 = vperm.xlu0 %1847, %v1383_v38  }
 0xa11   : > { %v1388_v39 = vpop.permute.xlu0 %1387 }
 0xa12   : > { %v1390_v40 = vsel %vm1384_vm3, %v1388_v39, %v2661_v28 }
 0xa13   : > { %1391 = vst [vmem:[%s765_s27] sm:$0xff] %v1390_v40 }
 0xa14   : > { %2123 = shalt.err (!%p2120_p11)
}
 0xa15   : > { %s2124_s0 = scalar_lea.hbm %s2743_s17, 128  ;;  %s2128_s27 = scalar_lea.hbm %s2860_s29, 256 }
 0xa16   : > { %p2125_p8 = scmp.ne.s32.totalorder %s2743_s17, %s2124_s0  ;;  %p2129_p6 = scmp.lt.u32.totalorder %s2743_s17, %s2860_s29 }
 0xa17   : > { %p2130_p9 = scmp.lt.u32.totalorder %s2128_s27, %s2124_s0  ;;  %p2132_p13 = scmp.lt.u32.totalorder %s2124_s0, %s2743_s17 }
 0xa18   : > { %p2126_p5 = pnand %p2125_p8, %p2861_p1 }
 0xa19   : > { %p2131_p12 = por %p2130_p9, %p2129_p6 }
 0xa1a   : > { %p2127_p7 = pneg %p2126_p5 }
 0xa1b   : > { %p2133_p3 = por %p2132_p13, %p2131_p12 }
 0xa1d   : > { %p2134_p2 = pnand %p2133_p3, %p2127_p7 }
 0xa1f   : > { %2137 = shalt.err (!%p2134_p2)
}
 0xa20   : > { %1740 = dma.vmem_to_hbm [thread:$0]  (%p2861_p1), %s2745_s18, 128, %s2743_s17, %s1393_s26  }
 0xa21 PF: > { %s1418_s3 = sand.u32 1, %s2180_s23   ;;  %p2862_p0 = scmp.ne.s32.totalorder %s2839_s20, 0 }
 0xa22   : > { %p2863_p4 = scmp.ge.s32.totalorder %s2192_s25, 2  ;;  %s1419_s19 = scalar_lea.sflag [#allocation5], %s1418_s3 }
 0xa24   : > { %p1772_p10 = pnand %p2863_p4, %p2862_p0 }
 0xa26   : > { %2175 = dma.done.wait (!%p1772_p10), %s1419_s19, 128  }
 0xa27   : > { %2177 = vsyncadd (!%p1772_p10), %s1419_s19, 4294967168  ;;  %p39_p11 = scmp.ge.s32.totalorder %s2541_s28, 4   ;;  %s2864_s23 = smov %s2184_s24 }
 0xa28   : > { %s2865_s24 = smov %s2188_s2  ;;  %s2866_s2 = smov %s2552_s13 }
 0xa29   : > { %s2867_s25 = smov %s2541_s28  ;;  %41 = sbr.rel (!%p39_p11) target bundleno = 23 (0x17), region = 180 }
 0xa30   :  { %1424 = vsyncpa [#allocation4], 1 }
 0xa31   :  { %1426 = vsyncpa [#allocation4 + $0x1], 1 }
 0xa32   :  { %1427 = vsyncpa [#allocation7], 1 }
 0xa33   :  { %1428 = vsyncpa [#allocation10], 1 }
 0xa34   :  { %1429 = vsyncpa [#allocation13], 1 }
 0xa35   :  { %1430 = vsyncpa [#allocation16], 1 }
 0xa36   :  { %1431 = vsyncpa [#allocation5], 1 }
 0xa37   :  { %1433 = vsyncpa [#allocation5 + $0x1], 1 }

</bundles_post_ra>
